<compile_context>
chip_gen: v5e
topology: v5e:2x2
jax: 0.10.0
libtpu: 0.0.40
codegen_flags: <defaults>
</compile_context>

<pallas_src>
import functools

import jax
import jax.numpy as jnp
from jax.experimental import pallas as pl
from jax.experimental.pallas import tpu as pltpu


def _embedding_kernel(x_ref, o_ref, *, freq_bands, C):
    # x_ref: (C, TB) VMEM tile (channels on sublanes, batch on lanes).
    # o_ref: ((2*N+1)*C, TB) VMEM tile.
    x = x_ref[...]
    o_ref[0:C, :] = x.astype(o_ref.dtype)
    for k, f in enumerate(freq_bands):  # static unroll; N_freqs is compile-time const
        xf = x * f
        o_ref[(2 * k + 1) * C:(2 * k + 2) * C, :] = jnp.sin(xf).astype(o_ref.dtype)
        o_ref[(2 * k + 2) * C:(2 * k + 3) * C, :] = jnp.cos(xf).astype(o_ref.dtype)


def _freq_bands(N_freqs, logscale):
    if logscale:
        return [float(2.0 ** k) for k in range(N_freqs)]
    if N_freqs == 1:
        return [1.0]
    hi = 2.0 ** (N_freqs - 1)
    return [float(1.0 + i * (hi - 1.0) / (N_freqs - 1)) for i in range(N_freqs)]


def _default_block_b(B, out_channels, itemsize, target_bytes=2 << 20):
    """Pick a lane-aligned batch tile whose output slab is ~target_bytes."""
    if B % 128 != 0:
        return B  # small / odd batch: single full block
    tb = (target_bytes // (out_channels * itemsize)) // 128 * 128
    tb = max(128, tb)
    # Keep >= 2 grid steps when possible (balances v7x's two TensorCores).
    tb = min(tb, max(128, (B // 2) // 128 * 128))
    tb = min(tb, B)
    while B % tb != 0:  # terminates: 128 always divides B here
        tb -= 128
    return tb


def nerf_embedding(x, N_freqs, logscale=True, *, block_b=None, out_dtype=None):
    """x: (B, C) float array -> (B, C * (2*N_freqs + 1)), torch Embedding.forward order."""
    B, C = x.shape
    out_channels = C * (2 * N_freqs + 1)
    out_dtype = x.dtype if out_dtype is None else out_dtype
    freq_bands = _freq_bands(N_freqs, logscale)

    if block_b is None:
        block_b = _default_block_b(B, out_channels, jnp.dtype(out_dtype).itemsize)
    assert B % block_b == 0, "block_b must divide B"
    assert block_b % 128 == 0 or block_b == B, "block_b must be lane-aligned (x128) or == B"

    kernel = functools.partial(_embedding_kernel, freq_bands=freq_bands, C=C)

    # Lane-dense layout: batch on the lane axis.
    x_t = x.T  # (C, B) — wrapper-side layout plumbing

    out_t = pl.pallas_call(
        kernel,
        out_shape=jax.ShapeDtypeStruct((out_channels, B), out_dtype),
        grid_spec=pltpu.PrefetchScalarGridSpec(
            num_scalar_prefetch=0,
            grid=(B // block_b,),
            in_specs=[pl.BlockSpec((C, block_b), lambda i: (0, i))],
            out_specs=pl.BlockSpec((out_channels, block_b), lambda i: (0, i)),
        ),
        compiler_params=pltpu.CompilerParams(
            dimension_semantics=("parallel",),
        ),
    )(x_t)

    return out_t.T  # (B, out_channels), matching torch.cat(..., -1) ordering


def nerf_embedding_ref(x, N_freqs, logscale=True):
    """Pure-JAX reference mirroring the PyTorch forward."""
    if logscale:
        freq_bands = 2.0 ** jnp.linspace(0.0, N_freqs - 1, N_freqs)
    else:
        freq_bands = jnp.linspace(1.0, 2.0 ** (N_freqs - 1), N_freqs)
    out = [x]
    for f in freq_bands:
        out.append(jnp.sin(f * x))
        out.append(jnp.cos(f * x))
    return jnp.concatenate(out, axis=-1)


if __name__ == "__main__":
    key = jax.random.PRNGKey(0)
    B, C, N_freqs = 256, 3, 10  # small NeRF xyz embedding (grid of 2 tiles of 128)
    x = jax.random.uniform(key, (B, C), dtype=jnp.float32, minval=-1.0, maxval=1.0)

    out = nerf_embedding(x, N_freqs, logscale=True)
    out = jax.block_until_ready(out)

    ref = nerf_embedding_ref(x, N_freqs, logscale=True)
    assert out.shape == (B, C * (2 * N_freqs + 1)), out.shape
    assert jnp.allclose(out, ref, atol=1e-5, rtol=1e-5), "mismatch vs reference"

    # Also exercise the single-block path (block_b == B) for odd batch handling.
    x_small = x[:40]
    out_small = jax.block_until_ready(nerf_embedding(x_small, N_freqs, logscale=True))
    assert jnp.allclose(out_small, nerf_embedding_ref(x_small, N_freqs), atol=1e-5, rtol=1e-5)

    print("KERNEL_OK")
</pallas_src>

<mosaic_0001>
module attributes {stable_mosaic.version = 11 : i64} {
  func.func @_embedding_kernel(%arg0: i32, %arg1: memref<3x128xf32, #tpu.memory_space<vmem>>, %arg2: memref<63x128xf32, #tpu.memory_space<vmem>>) attributes {dimension_semantics = [#tpu.dimension_semantics<parallel>], iteration_bounds = array<i64: 2>, scalar_prefetch = 0 : i64, scratch_operands = 0 : i64, tpu.core_type = #tpu.core_type<tc>, window_params = [{transform_indices = @transform_0, window_bounds = array<i64: 3, 128>}, {transform_indices = @transform_1, window_bounds = array<i64: 63, 128>}]} {
    %c0 = arith.constant 0 : index
    %c0_0 = arith.constant 0 : index
    %0 = vector.load %arg1[%c0, %c0_0] : memref<3x128xf32, #tpu.memory_space<vmem>>, vector<3x128xf32>
    %c0_1 = arith.constant 0 : index
    %c0_2 = arith.constant 0 : index
    %1 = vector.load %arg2[%c0_1, %c0_2] : memref<63x128xf32, #tpu.memory_space<vmem>>, vector<3x128xf32>
    tpu.vector_store %arg2[%c0_1, %c0_2], %0 {strides = array<i32>} : memref<63x128xf32, #tpu.memory_space<vmem>>, vector<3x128xf32>,
    %cst = arith.constant 1.000000e+00 : f32
    %2 = vector.broadcast %cst : f32 to vector<3x128xf32>
    %3 = arith.mulf %0, %2 : vector<3x128xf32>
    %4 = math.sin %3 : vector<3x128xf32>
    %c3 = arith.constant 3 : index
    %c0_3 = arith.constant 0 : index
    %5 = vector.load %arg2[%c3, %c0_3] : memref<63x128xf32, #tpu.memory_space<vmem>>, vector<3x128xf32>
    tpu.vector_store %arg2[%c3, %c0_3], %4 {strides = array<i32>} : memref<63x128xf32, #tpu.memory_space<vmem>>, vector<3x128xf32>,
    %6 = math.cos %3 : vector<3x128xf32>
    %c6 = arith.constant 6 : index
    %c0_4 = arith.constant 0 : index
    %7 = vector.load %arg2[%c6, %c0_4] : memref<63x128xf32, #tpu.memory_space<vmem>>, vector<3x128xf32>
    tpu.vector_store %arg2[%c6, %c0_4], %6 {strides = array<i32>} : memref<63x128xf32, #tpu.memory_space<vmem>>, vector<3x128xf32>,
    %cst_5 = arith.constant 2.000000e+00 : f32
    %8 = vector.broadcast %cst_5 : f32 to vector<3x128xf32>
    %9 = arith.mulf %0, %8 : vector<3x128xf32>
    %10 = math.sin %9 : vector<3x128xf32>
    %c9 = arith.constant 9 : index
    %c0_6 = arith.constant 0 : index
    %11 = vector.load %arg2[%c9, %c0_6] : memref<63x128xf32, #tpu.memory_space<vmem>>, vector<3x128xf32>
    tpu.vector_store %arg2[%c9, %c0_6], %10 {strides = array<i32>} : memref<63x128xf32, #tpu.memory_space<vmem>>, vector<3x128xf32>,
    %12 = math.cos %9 : vector<3x128xf32>
    %c12 = arith.constant 12 : index
    %c0_7 = arith.constant 0 : index
    %13 = vector.load %arg2[%c12, %c0_7] : memref<63x128xf32, #tpu.memory_space<vmem>>, vector<3x128xf32>
    tpu.vector_store %arg2[%c12, %c0_7], %12 {strides = array<i32>} : memref<63x128xf32, #tpu.memory_space<vmem>>, vector<3x128xf32>,
    %cst_8 = arith.constant 4.000000e+00 : f32
    %14 = vector.broadcast %cst_8 : f32 to vector<3x128xf32>
    %15 = arith.mulf %0, %14 : vector<3x128xf32>
    %16 = math.sin %15 : vector<3x128xf32>
    %c15 = arith.constant 15 : index
    %c0_9 = arith.constant 0 : index
    %17 = vector.load %arg2[%c15, %c0_9] : memref<63x128xf32, #tpu.memory_space<vmem>>, vector<3x128xf32>
    tpu.vector_store %arg2[%c15, %c0_9], %16 {strides = array<i32>} : memref<63x128xf32, #tpu.memory_space<vmem>>, vector<3x128xf32>,
    %18 = math.cos %15 : vector<3x128xf32>
    %c18 = arith.constant 18 : index
    %c0_10 = arith.constant 0 : index
    %19 = vector.load %arg2[%c18, %c0_10] : memref<63x128xf32, #tpu.memory_space<vmem>>, vector<3x128xf32>
    tpu.vector_store %arg2[%c18, %c0_10], %18 {strides = array<i32>} : memref<63x128xf32, #tpu.memory_space<vmem>>, vector<3x128xf32>,
    %cst_11 = arith.constant 8.000000e+00 : f32
    %20 = vector.broadcast %cst_11 : f32 to vector<3x128xf32>
    %21 = arith.mulf %0, %20 : vector<3x128xf32>
    %22 = math.sin %21 : vector<3x128xf32>
    %c21 = arith.constant 21 : index
    %c0_12 = arith.constant 0 : index
    %23 = vector.load %arg2[%c21, %c0_12] : memref<63x128xf32, #tpu.memory_space<vmem>>, vector<3x128xf32>
    tpu.vector_store %arg2[%c21, %c0_12], %22 {strides = array<i32>} : memref<63x128xf32, #tpu.memory_space<vmem>>, vector<3x128xf32>,
    %24 = math.cos %21 : vector<3x128xf32>
    %c24 = arith.constant 24 : index
    %c0_13 = arith.constant 0 : index
    %25 = vector.load %arg2[%c24, %c0_13] : memref<63x128xf32, #tpu.memory_space<vmem>>, vector<3x128xf32>
    tpu.vector_store %arg2[%c24, %c0_13], %24 {strides = array<i32>} : memref<63x128xf32, #tpu.memory_space<vmem>>, vector<3x128xf32>,
    %cst_14 = arith.constant 1.600000e+01 : f32
    %26 = vector.broadcast %cst_14 : f32 to vector<3x128xf32>
    %27 = arith.mulf %0, %26 : vector<3x128xf32>
    %28 = math.sin %27 : vector<3x128xf32>
    %c27 = arith.constant 27 : index
    %c0_15 = arith.constant 0 : index
    %29 = vector.load %arg2[%c27, %c0_15] : memref<63x128xf32, #tpu.memory_space<vmem>>, vector<3x128xf32>
    tpu.vector_store %arg2[%c27, %c0_15], %28 {strides = array<i32>} : memref<63x128xf32, #tpu.memory_space<vmem>>, vector<3x128xf32>,
    %30 = math.cos %27 : vector<3x128xf32>
    %c30 = arith.constant 30 : index
    %c0_16 = arith.constant 0 : index
    %31 = vector.load %arg2[%c30, %c0_16] : memref<63x128xf32, #tpu.memory_space<vmem>>, vector<3x128xf32>
    tpu.vector_store %arg2[%c30, %c0_16], %30 {strides = array<i32>} : memref<63x128xf32, #tpu.memory_space<vmem>>, vector<3x128xf32>,
    %cst_17 = arith.constant 3.200000e+01 : f32
    %32 = vector.broadcast %cst_17 : f32 to vector<3x128xf32>
    %33 = arith.mulf %0, %32 : vector<3x128xf32>
    %34 = math.sin %33 : vector<3x128xf32>
    %c33 = arith.constant 33 : index
    %c0_18 = arith.constant 0 : index
    %35 = vector.load %arg2[%c33, %c0_18] : memref<63x128xf32, #tpu.memory_space<vmem>>, vector<3x128xf32>
    tpu.vector_store %arg2[%c33, %c0_18], %34 {strides = array<i32>} : memref<63x128xf32, #tpu.memory_space<vmem>>, vector<3x128xf32>,
    %36 = math.cos %33 : vector<3x128xf32>
    %c36 = arith.constant 36 : index
    %c0_19 = arith.constant 0 : index
    %37 = vector.load %arg2[%c36, %c0_19] : memref<63x128xf32, #tpu.memory_space<vmem>>, vector<3x128xf32>
    tpu.vector_store %arg2[%c36, %c0_19], %36 {strides = array<i32>} : memref<63x128xf32, #tpu.memory_space<vmem>>, vector<3x128xf32>,
    %cst_20 = arith.constant 6.400000e+01 : f32
    %38 = vector.broadcast %cst_20 : f32 to vector<3x128xf32>
    %39 = arith.mulf %0, %38 : vector<3x128xf32>
    %40 = math.sin %39 : vector<3x128xf32>
    %c39 = arith.constant 39 : index
    %c0_21 = arith.constant 0 : index
    %41 = vector.load %arg2[%c39, %c0_21] : memref<63x128xf32, #tpu.memory_space<vmem>>, vector<3x128xf32>
    tpu.vector_store %arg2[%c39, %c0_21], %40 {strides = array<i32>} : memref<63x128xf32, #tpu.memory_space<vmem>>, vector<3x128xf32>,
    %42 = math.cos %39 : vector<3x128xf32>
    %c42 = arith.constant 42 : index
    %c0_22 = arith.constant 0 : index
    %43 = vector.load %arg2[%c42, %c0_22] : memref<63x128xf32, #tpu.memory_space<vmem>>, vector<3x128xf32>
    tpu.vector_store %arg2[%c42, %c0_22], %42 {strides = array<i32>} : memref<63x128xf32, #tpu.memory_space<vmem>>, vector<3x128xf32>,
    %cst_23 = arith.constant 1.280000e+02 : f32
    %44 = vector.broadcast %cst_23 : f32 to vector<3x128xf32>
    %45 = arith.mulf %0, %44 : vector<3x128xf32>
    %46 = math.sin %45 : vector<3x128xf32>
    %c45 = arith.constant 45 : index
    %c0_24 = arith.constant 0 : index
    %47 = vector.load %arg2[%c45, %c0_24] : memref<63x128xf32, #tpu.memory_space<vmem>>, vector<3x128xf32>
    tpu.vector_store %arg2[%c45, %c0_24], %46 {strides = array<i32>} : memref<63x128xf32, #tpu.memory_space<vmem>>, vector<3x128xf32>,
    %48 = math.cos %45 : vector<3x128xf32>
    %c48 = arith.constant 48 : index
    %c0_25 = arith.constant 0 : index
    %49 = vector.load %arg2[%c48, %c0_25] : memref<63x128xf32, #tpu.memory_space<vmem>>, vector<3x128xf32>
    tpu.vector_store %arg2[%c48, %c0_25], %48 {strides = array<i32>} : memref<63x128xf32, #tpu.memory_space<vmem>>, vector<3x128xf32>,
    %cst_26 = arith.constant 2.560000e+02 : f32
    %50 = vector.broadcast %cst_26 : f32 to vector<3x128xf32>
    %51 = arith.mulf %0, %50 : vector<3x128xf32>
    %52 = math.sin %51 : vector<3x128xf32>
    %c51 = arith.constant 51 : index
    %c0_27 = arith.constant 0 : index
    %53 = vector.load %arg2[%c51, %c0_27] : memref<63x128xf32, #tpu.memory_space<vmem>>, vector<3x128xf32>
    tpu.vector_store %arg2[%c51, %c0_27], %52 {strides = array<i32>} : memref<63x128xf32, #tpu.memory_space<vmem>>, vector<3x128xf32>,
    %54 = math.cos %51 : vector<3x128xf32>
    %c54 = arith.constant 54 : index
    %c0_28 = arith.constant 0 : index
    %55 = vector.load %arg2[%c54, %c0_28] : memref<63x128xf32, #tpu.memory_space<vmem>>, vector<3x128xf32>
    tpu.vector_store %arg2[%c54, %c0_28], %54 {strides = array<i32>} : memref<63x128xf32, #tpu.memory_space<vmem>>, vector<3x128xf32>,
    %cst_29 = arith.constant 5.120000e+02 : f32
    %56 = vector.broadcast %cst_29 : f32 to vector<3x128xf32>
    %57 = arith.mulf %0, %56 : vector<3x128xf32>
    %58 = math.sin %57 : vector<3x128xf32>
    %c57 = arith.constant 57 : index
    %c0_30 = arith.constant 0 : index
    %59 = vector.load %arg2[%c57, %c0_30] : memref<63x128xf32, #tpu.memory_space<vmem>>, vector<3x128xf32>
    tpu.vector_store %arg2[%c57, %c0_30], %58 {strides = array<i32>} : memref<63x128xf32, #tpu.memory_space<vmem>>, vector<3x128xf32>,
    %60 = math.cos %57 : vector<3x128xf32>
    %c60 = arith.constant 60 : index
    %c0_31 = arith.constant 0 : index
    %61 = vector.load %arg2[%c60, %c0_31] : memref<63x128xf32, #tpu.memory_space<vmem>>, vector<3x128xf32>
    tpu.vector_store %arg2[%c60, %c0_31], %60 {strides = array<i32>} : memref<63x128xf32, #tpu.memory_space<vmem>>, vector<3x128xf32>,
    return
  }
  func.func @transform_0(%arg0: i32) -> (i32, i32) {
    %c0_i32 = arith.constant 0 : i32
    %c0_i32_0 = arith.constant 0 : i32
    return %c0_i32, %arg0 : i32, i32
  }
  func.func @transform_1(%arg0: i32) -> (i32, i32) {
    %c0_i32 = arith.constant 0 : i32
    %c0_i32_0 = arith.constant 0 : i32
    return %c0_i32, %arg0 : i32, i32
  }
}

</mosaic_0001>

<bundles_post_ra>
// kernel: tpu_custom_call.1
= control target key start
LH: loop header
LB: loop body
LE: loop exit
PB: predicated region body
PF: predicated region fallthrough
CT: control target
= control target key end

     0   :  { %6 = vsyncpa [#allocation3], 0  ;;  %s4933_s0 = inlined_call_operand.hbm [shape: f32[3,256], index: 0, kind: input, shape index: {}]   ;;  %s4934_s1 = inlined_call_operand.hbm [shape: f32[63,256], index: 1, kind: output, shape index: {}]  }
   0x1   :  { %8 = vsyncpa [#allocation3 + $0x1], 0 }
   0x2   :  { %9 = vsyncpa [#allocation4], 0 }
   0x3   :  { %11 = vsyncpa [#allocation4 + $0x1], 0  ;;  %s3589_s6 = smov 0   ;;  %s3591_s7 = smov 0  }
   0x4   :  { %s3593_s8 = smov 0   ;;  %s3595_s9 = smov 0  }
   0x5 LB: > { %s3610_s10 = sadd.s32 4294967295, %s3567_s9   ;;  %s3343_s11 = sadd.s32 4294967294, %s3567_s9   ;;  %s3567_s9 = sphi %s3595_s9, %s4960_s9   ;;  %s3563_s8 = sphi %s3593_s8, %s4959_s8   ;;  %s3559_s7 = sphi %s3591_s7, %s4958_s7   ;;  %s3555_s6 = sphi %s3589_s6, %s4957_s6  }
   0x6   : > { %s3614_s12 = sadd.s32 1, %s3567_s9   ;;  %s24_s13 = sadd.s32 1, %s3563_s8 }
   0x7   : > { %s21_s14 = ssub.s32 %s3567_s9, %s3614_s12  ;;  %p31_p0 = scmp.ne.s32.totalorder %s3563_s8, %s3559_s7 }
   0x8   : > { %p22_p1 = scmp.eq.s32.totalorder %s21_s14, 0  ;;  %p32_p2 = scmp.eq.s32.totalorder %s3567_s9, 0 }
   0x9   : > { %p37_p3 = scmp.ne.s32.totalorder %s3559_s7, %s3555_s6  ;;  %p38_p4 = scmp.eq.s32.totalorder %s3610_s10, 0 }
   0xa   : > { %s3626_s15 = scalar_select %p22_p1, %s3563_s8, %s24_s13  }
   0xb   : > { %p3628_p5 = por %p32_p2, %p31_p0  ;;  %p3632_p6 = por %p38_p4, %p37_p3 }
   0xc   : > { %p61_p7 = scmp.eq.s32.totalorder %s3610_s10, 1  ;;  %p67_p8 = scmp.eq.s32.totalorder %s3343_s11, 1 }
   0xd   : > { %p3427_p10 = scmp.lt.s32.totalorder %s3567_s9, 2  ;;  %s87_s20 = sand.u32 1, %s3563_s8  }
   0xe   : > { %p3639_p11 = por %p61_p7, %p31_p0  ;;  %p3643_p12 = por %p67_p8, %p37_p3 }
   0xf   : > { %s3347_s21 = sshll.u32 %s3567_s9, 2  ;;  %s3346_s22 = sshll.u32 %s87_s20, 2 }
  0x10   : > { %s95_s25 = scalar_lea.hbm %s4933_s0, %s3347_s21  ;;  %s91_s27 = scalar_lea.vmem [#allocation2], %s3346_s22 }
  0x11   : > { %s97_s26 = sshll.u32 %s95_s25, 4  ;;  %s99_s28 = sshll.u32 %s91_s27, 4  ;;  %s98_s26 = int_to_ptr.hbm [resolvable:$true] %s97_s26  ;;  %s100_s28 = int_to_ptr.vmem [resolvable:$true] %s99_s28 }
  0x12   : > { %p3654_p13 = pnand %p3427_p10, %p3628_p5  ;;  %p3348_p0 = scmp.ge.s32.totalorder %s3567_s9, 1 }
  0x13   : > { %p104_p1 = scmp.lt.s32.totalorder %s3567_s9, 3  ;;  %s88_s30 = scalar_lea.sflag [#allocation3], %s87_s20 }
  0x14   : > { %s3471_s2 = sshra.s32 %s98_s26, 4  ;;  %p3475_p3 = pneg %p3654_p13  ;;  %s3472_s2 = int_to_ptr.hbm [resolvable:$true] %s3471_s2 }
  0x15   : > { %s3473_s3 = scalar_lea.hbm %s3472_s2, 4  ;;  %s3478_s11 = scalar_lea.hbm %s4933_s0, 8 }
  0x16   : > { %p3474_p2 = scmp.ne.s32.totalorder %s3472_s2, %s3473_s3  ;;  %p3479_p5 = scmp.lt.s32.totalorder %s3472_s2, %s4933_s0 }
  0x17   : > { %p3480_p8 = scmp.lt.s32.totalorder %s3478_s11, %s3473_s3 }
  0x18   : > { %p3476_p4 = pnand %p3475_p3, %p3474_p2 }
  0x19   : > { %p3481_p10 = por %p3480_p8, %p3479_p5 }
  0x1a   : > { %p3477_p7 = pneg %p3476_p4 }
  0x1c   : > { %p3482_p9 = pnand %p3481_p10, %p3477_p7 }
  0x1e   : > { %3485 = shalt.err (!%p3482_p9)
}
  0x1f   : > { %3422 = dma.hbm_to_vmem [thread:$0]  (!%p3654_p13), %s98_s26, 64, %s100_s28, %s88_s30  }
  0x20   : > { %p105_p2 = pnand %p3348_p0, %p104_p1 }
  0x21   : > { %s3675_s16 = sand.u32 (!%p105_p2), 1, %s3559_s7  }
  0x22   : > { %108 = sbr.rel (%p105_p2) target bundleno = 480 (0x1e0), region = 24  ;;  %s3349_s20 = sshll.u32 (!%p105_p2), %s3675_s16, 2 }
  0x23   : > { %s111_s21 = scalar_lea.sflag (!%p105_p2), [#allocation3], %s3675_s16  ;;  %s114_s22 = scalar_lea.vmem (!%p105_p2), [#allocation2], %s3349_s20 }
  0x27   : > { %3546 = dma.done.wait (%p3632_p6), %s111_s21, 64  }
  0x28   : > { %3548 = vsyncadd (%p3632_p6), %s111_s21, 4294967232  ;;  %s3350_s23 = sshll.u32 %s3675_s16, 6  ;;  %v3684_v0 = vld [vmem:[%s114_s22] sm:$0x7]  ;;  %v3569_v25 = vmov 683565275  }
  0x29   : > { %s3686_s24 = scalar_lea.vmem [#allocation5], %s3350_s23  ;;  %v136_v1 = vand.u32 2147483647, %v3684_v0  ;;  %v139_v2 = vand.u32 2139095040, %v3684_v0  ;;  %v3693_v3 = vmul.f32 2.0, %v3684_v0  ;;  %v3696_v4 = vmul.f32 4.0, %v3684_v0 }
  0x2a   : > { %135 = vst [vmem:[%s3686_s24] sm:$0x7] %v3684_v0  ;;  %v3570_v27 = vmov 2475754826   ;;  %v3571_v29 = vmov 2131351028   ;;  %s3412_s17 = sshll.u32 %s3610_s10, 3 }
  0x2b   : > { %v140_v5 = vshrl.u32 %v139_v2, 23  ;;  %v143_v6 = vand.u32 8388607, %v136_v1  ;;  %v451_v7 = vand.u32 2139095040, %v3693_v3  ;;  %v448_v8 = vand.u32 2147483647, %v3693_v3  ;;  %s3266_s27 = scalar_lea.hbm %s4934_s1, %s3412_s17 }
  0x2c   : > { %v763_v9 = vand.u32 2139095040, %v3696_v4  ;;  %v3572_v31 = vmov 2102212464   ;;  %v3573_v33 = vmov 920167782   ;;  %s3267_s28 = sshll.u32 %s3686_s24, 4  ;;  %s3268_s28 = int_to_ptr.vmem [resolvable:$true] %s3267_s28 }
  0x2d   : > { %v3351_v10 = vadd.s32 4294967169, %v140_v5  ;;  %v452_v11 = vshrl.u32 %v451_v7, 23  ;;  %v144_v12 = vor.u32 8388608, %v143_v6  ;;  %v455_v15 = vand.u32 8388607, %v448_v8  ;;  %s3269_s10 = sshll.u32 %s3266_s27, 4  ;;  %s3270_s10 = int_to_ptr.hbm [resolvable:$true] %s3269_s10 }
  0x2e   : > { %v764_v16 = vshrl.u32 %v763_v9, 23  ;;  %v3574_v42 = vmov 1326507024   ;;  %s3256_s29 = scalar_lea.sflag [#allocation4], %s3675_s16  ;;  %s3515_s30 = sshra.s32 %s3270_s10, 4  ;;  %s3516_s30 = int_to_ptr.hbm [resolvable:$true] %s3515_s30 }
  0x2f   : > { %v146_v13 = vadd.s32 1, %v3351_v10  ;;  %v3357_v14 = vadd.s32 4294967169, %v452_v11  ;;  %v3705_v19 = vshll.u32 %v144_v12, 8  ;;  %v456_v22 = vor.u32 8388608, %v455_v15  ;;  %s3517_s2 = scalar_lea.hbm %s3516_s30, 64  ;;  %s3521_s5 = scalar_lea.hbm %s4934_s1, 128 }
  0x30   : > { %v3707_v23 = vadd.s32 4294967169, %v764_v16  ;;  %p3518_p6 = scmp.ne.s32.totalorder %s3516_s30, %s3517_s2  ;;  %p3522_p0 = scmp.lt.s32.totalorder %s3516_s30, %s4934_s1 }
  0x31   : > { %vm147_vm0 = vcmp.gt.s32.totalorder %v146_v13, 0  ;;  %v458_v17 = vadd.s32 1, %v3357_v14  ;;  %v185_v35 = vand.u32 65535, %v3705_v19  ;;  %v186_v60 = vshrl.u32 %v3705_v19, 16  ;;  %p3523_p1 = scmp.lt.s32.totalorder %s3521_s5, %s3517_s2 }
  0x32   : > { %v148_v18 = vsel %vm147_vm0, %v146_v13, 0  ;;  %v3728_v61 = vshll.u32 %v456_v22, 8  ;;  %p3519_p9 = pnand %p3518_p6, %p3639_p11 }
  0x33   : > { %v150_v20 = vand.u32 31, %v148_v18  ;;  %vm459_vm1 = vcmp.gt.s32.totalorder %v458_v17, 0  ;;  %v149_v21 = vshrl.u32 %v148_v18, 5  ;;  %p3524_p3 = por %p3523_p1, %p3522_p0 }
  0x34   : > { %v460_v36 = vsel %vm459_vm1, %v458_v17, 0  ;;  %p3520_p13 = pneg %p3519_p9 }
  0x35   : > { %v151_v24 = vsub.s32 32, %v150_v20  ;;  %v153_v26 = vshll.u32 %v3569_v25, %v150_v20  ;;  %v156_v28 = vshll.u32 %v3570_v27, %v150_v20  ;;  %v159_v30 = vshll.u32 %v3571_v29, %v150_v20 }
  0x36   : > { %v162_v32 = vshll.u32 %v3572_v31, %v150_v20  ;;  %v165_v34 = vshll.u32 %v3573_v33, %v150_v20  ;;  %vm168_vm2 = vcmp.lt.s32.totalorder %v149_v21, 1  ;;  %vm169_vm3 = vcmp.lt.s32.totalorder %v149_v21, 2  ;;  %p3525_p4 = pnand %p3524_p3, %p3520_p13 }
  0x37   : > { %v152_v37 = vshrl.u32 %v3569_v25, %v151_v24  ;;  %v154_v38 = vshrl.u32 %v3570_v27, %v151_v24  ;;  %v157_v39 = vshrl.u32 %v3571_v29, %v151_v24  ;;  %v160_v40 = vshrl.u32 %v3572_v31, %v151_v24 }
  0x38   : > { %v163_v41 = vshrl.u32 %v3573_v33, %v151_v24  ;;  %v166_v43 = vshrl.u32 %v3574_v42, %v151_v24  ;;  %vm171_vm4 = vcmp.lt.s32.totalorder %v149_v21, 4  ;;  %vm170_vm5 = vcmp.lt.s32.totalorder %v149_v21, 3 }
  0x39   : > { %v155_v44 = vor.u32 %v154_v38, %v153_v26  ;;  %v158_v45 = vor.u32 %v157_v39, %v156_v28  ;;  %v161_v46 = vor.u32 %v160_v40, %v159_v30  ;;  %v3722_v49 = vand.u32 31, %v460_v36 }
  0x3a   : > { %v164_v47 = vor.u32 %v163_v41, %v162_v32  ;;  %v167_v48 = vor.u32 %v166_v43, %v165_v34  ;;  %v3735_v5 = vshrl.u32 %v460_v36, 5  ;;  %v3575_v43 = vmov 0  }
  0x3b   : > { %v172_v50 = vsel %vm168_vm2, %v152_v37, %v155_v44  ;;  %v173_v51 = vsel %vm171_vm4, %v161_v46, 2102212464  ;;  %v176_v52 = vsel %vm168_vm2, %v155_v44, %v158_v45  ;;  %v180_v53 = vsel %vm168_vm2, %v158_v45, %v161_v46 }
  0x3c   : > { %v174_v54 = vsel %vm170_vm5, %v158_v45, %v173_v51  ;;  %v177_v55 = vsel %vm171_vm4, %v164_v47, 920167782  ;;  %v181_v56 = vsel %vm171_vm4, %v167_v48, 1326507024  ;;  %v3725_v57 = vsub.s32 32, %v3722_v49 }
  0x3d   : > { %v178_v58 = vsel %vm170_vm5, %v161_v46, %v177_v55  ;;  %v182_v59 = vsel %vm170_vm5, %v164_v47, %v181_v56  ;;  %v3731_v62 = vsel %vm169_vm3, %v172_v50, %v174_v54  ;;  %v465_v11 = vshll.u32 %v3569_v25, %v3722_v49 }
  0x3e   : > { %v179_v63 = vsel %vm169_vm3, %v176_v52, %v178_v58  ;;  %v183_v2 = vsel %vm169_vm3, %v180_v53, %v182_v59  ;;  %v466_v12 = vshrl.u32 %v3570_v27, %v3725_v57  ;;  %v468_v13 = vshll.u32 %v3570_v27, %v3722_v49 }
  0x3f   : > { %v187_v6 = vand.u32 65535, %v183_v2  ;;  %v188_v7 = vshrl.u32 %v183_v2, 16  ;;  %v209_v9 = vand.u32 65535, %v179_v63  ;;  %v210_v10 = vshrl.u32 %v179_v63, 16 }
  0x40   : > { %v469_v14 = vshrl.u32 %v3571_v29, %v3725_v57  ;;  %v471_v18 = vshll.u32 %v3571_v29, %v3722_v49  ;;  %v3747_v41 = vor.u32 %v466_v12, %v465_v11  ;;  %v474_v48 = vshll.u32 %v3572_v31, %v3722_v49 }
  0x41   : > { %v189_v15 = vmul.u32 %v187_v6, %v185_v35  ;;  %v190_v16 = vmul.u32 %v188_v7, %v185_v35  ;;  %v191_v17 = vmul.u32 %v187_v6, %v186_v60  ;;  %v192_v20 = vmul.u32 %v188_v7, %v186_v60 }
  0x42   : > { %v211_v21 = vmul.u32 %v209_v9, %v185_v35  ;;  %v212_v22 = vmul.u32 %v210_v10, %v185_v35  ;;  %v213_v24 = vmul.u32 %v209_v9, %v186_v60  ;;  %v214_v32 = vmul.u32 %v210_v10, %v186_v60 }
  0x43   : > { %v193_v26 = vshll.u32 %v190_v16, 16  ;;  %v194_v28 = vshrl.u32 %v190_v16, 16  ;;  %v195_v30 = vshll.u32 %v191_v17, 16  ;;  %v196_v34 = vshrl.u32 %v191_v17, 16 }
  0x44   : > { %v215_v36 = vshll.u32 %v212_v22, 16  ;;  %v216_v37 = vshrl.u32 %v212_v22, 16  ;;  %v217_v38 = vshll.u32 %v213_v24, 16  ;;  %v218_v40 = vshrl.u32 %v213_v24, 16 }
  0x45   : > { %vm197_vm6 = vc.u32 %v189_v15, %v193_v26  ;;  %v199_v39 = vadd.s32 %v193_v26, %v189_v15  ;;  %v472_v35 = vshrl.u32 %v3572_v31, %v3725_v57  ;;  %v470_v52 = vor.u32 %v469_v14, %v468_v13 }
  0x46   : > { %v198_v44 = vsel %vm197_vm6, 1, %v3575_v43  ;;  %vm219_vm7 = vc.u32 %v211_v21, %v215_v36  ;;  %v221_v45 = vadd.s32 %v215_v36, %v211_v21  ;;  %v475_v56 = vshrl.u32 %v3573_v33, %v3725_v57 }
  0x47   : > { %v200_v46 = vadd.s32 %v198_v44, %v192_v20  ;;  %vm201_vm8 = vc.u32 %v199_v39, %v195_v30  ;;  %v220_v47 = vsel %vm219_vm7, 1, %v3575_v43  ;;  %v473_v55 = vor.u32 %v472_v35, %v471_v18 }
  0x48   : > { %v202_v50 = vsel %vm201_vm8, 1, %v3575_v43  ;;  %v222_v51 = vadd.s32 %v220_v47, %v214_v32  ;;  %vm223_vm9 = vc.u32 %v221_v45, %v217_v38  ;;  %v477_v59 = vshll.u32 %v3573_v33, %v3722_v49 }
  0x49   : > { %v204_v53 = vadd.s32 %v202_v50, %v200_v46  ;;  %v224_v54 = vsel %vm223_vm9, 1, %v3575_v43  ;;  %v478_v60 = vshrl.u32 %v3574_v42, %v3725_v57  ;;  %vm480_vm10 = vcmp.lt.s32.totalorder %v3735_v5, 1 }
  0x4a   : > { %v226_v58 = vadd.s32 %v224_v54, %v222_v51  ;;  %v3764_v2 = vadd.s32 %v221_v45, %v217_v38  ;;  %v476_v6 = vor.u32 %v475_v56, %v474_v48  ;;  %vm482_vm11 = vcmp.lt.s32.totalorder %v3735_v5, 3 }
  0x4b   : > { %v205_v63 = vadd.s32 %v204_v53, %v194_v28  ;;  %v479_v9 = vor.u32 %v478_v60, %v477_v59  ;;  %vm481_vm12 = vcmp.lt.s32.totalorder %v3735_v5, 2  ;;  %vm483_vm13 = vcmp.lt.s32.totalorder %v3735_v5, 4 }
  0x4c   : > { %v227_v7 = vadd.s32 %v226_v58, %v216_v37  ;;  %v488_v49 = vsel %vm480_vm10, %v3747_v41, %v470_v52  ;;  %v489_v11 = vsel %vm483_vm13, %v476_v6, 920167782  ;;  %v770_v12 = vadd.s32 1, %v3707_v23 }
  0x4d   : > { %v3769_v10 = vadd.s32 %v205_v63, %v196_v34  ;;  %v490_v14 = vsel %vm482_vm11, %v473_v55, %v489_v11  ;;  %v497_v15 = vand.u32 65535, %v3728_v61  ;;  %v498_v16 = vshrl.u32 %v3728_v61, 16 }
  0x4e   : > { %v228_v13 = vadd.s32 %v227_v7, %v218_v40  ;;  %v229_v17 = vmul.u32 %v3705_v19, %v3731_v62  ;;  %v491_v18 = vsel %vm481_vm12, %v488_v49, %v490_v14  ;;  %v492_v23 = vsel %vm480_vm10, %v470_v52, %v473_v55 }
  0x4f   : > { %vm231_vm14 = vc.u32 %v3769_v10, %v3764_v2  ;;  %v493_v21 = vsel %vm483_vm13, %v479_v9, 1326507024  ;;  %v521_v22 = vand.u32 65535, %v491_v18  ;;  %v522_v24 = vshrl.u32 %v491_v18, 16 }
  0x50   : > { %v232_v20 = vadd.s32 1, %v228_v13  ;;  %v464_v26 = vshrl.u32 %v3569_v25, %v3725_v57  ;;  %v494_v19 = vsel %vm482_vm11, %v476_v6, %v493_v21  ;;  %vm771_vm15 = vcmp.gt.s32.totalorder %v770_v12, 0 }
  0x51   : > { %v495_v28 = vsel %vm481_vm12, %v492_v23, %v494_v19  ;;  %v523_v30 = vmul.u32 %v521_v22, %v497_v15  ;;  %v524_v32 = vmul.u32 %v522_v24, %v497_v15  ;;  %v525_v38 = vmul.u32 %v521_v22, %v498_v16 }
  0x52   : > { %v233_v62 = vsel %vm231_vm14, %v232_v20, %v228_v13  ;;  %v499_v36 = vand.u32 65535, %v495_v28  ;;  %v500_v37 = vshrl.u32 %v495_v28, 16  ;;  %v3797_v40 = vsel %vm771_vm15, %v770_v12, 0 }
  0x53   : > { %v234_v34 = vadd.s32 %v233_v62, %v229_v17  ;;  %v527_v39 = vshll.u32 %v524_v32, 16  ;;  %v485_v57 = vsel %vm483_vm13, %v473_v55, 2102212464  ;;  %v484_v46 = vsel %vm480_vm10, %v464_v26, %v3747_v41 }
  0x54   : > { %v501_v45 = vmul.u32 %v499_v36, %v497_v15  ;;  %v502_v35 = vmul.u32 %v500_v37, %v497_v15  ;;  %v503_v47 = vmul.u32 %v499_v36, %v498_v16  ;;  %v526_v48 = vmul.u32 %v522_v24, %v498_v16 }
  0x55   : > { %v235_v44 = vadd.s32 536870912, %v234_v34  ;;  %v529_v50 = vshll.u32 %v525_v38, 16  ;;  %v504_v53 = vmul.u32 %v500_v37, %v498_v16  ;;  %vm531_vm0 = vc.u32 %v523_v30, %v527_v39 }
  0x56   : > { %v505_v54 = vshll.u32 %v502_v35, 16  ;;  %v486_v56 = vsel %vm482_vm11, %v470_v52, %v485_v57  ;;  %v507_v58 = vshll.u32 %v503_v47, 16  ;;  %v532_v59 = vsel %vm531_vm0, 1, %v3575_v43 }
  0x57   : > { %v236_v51 = vshrl.u32 %v235_v44, 30  ;;  %v533_v55 = vadd.s32 %v527_v39, %v523_v30  ;;  %v774_v6 = vand.u32 31, %v3797_v40  ;;  %v528_v7 = vshrl.u32 %v524_v32, 16 }
  0x58   : > { %vm509_vm1 = vc.u32 %v501_v45, %v505_v54  ;;  %v511_v63 = vadd.s32 %v505_v54, %v501_v45  ;;  %v534_v9 = vadd.s32 %v532_v59, %v526_v48  ;;  %v506_v11 = vshrl.u32 %v502_v35, 16 }
  0x59   : > { %v237_v60 = vshll.u32 %v236_v51, 30  ;;  %v510_v41 = vsel %vm509_vm1, 1, %v3575_v43  ;;  %vm535_vm2 = vc.u32 %v533_v55, %v529_v50  ;;  %v508_v13 = vshrl.u32 %v503_v47, 16 }
  0x5a   : > { %v512_v12 = vadd.s32 %v510_v41, %v504_v53  ;;  %vm513_vm3 = vc.u32 %v511_v63, %v507_v58  ;;  %v530_v14 = vshrl.u32 %v525_v38, 16  ;;  %v536_v15 = vsel %vm535_vm2, 1, %v3575_v43 }
  0x5b   : > { %v238_v49 = vsub.s32 %v234_v34, %v237_v60  ;;  %v514_v52 = vsel %vm513_vm3, 1, %v3575_v43  ;;  %v538_v18 = vadd.s32 %v536_v15, %v534_v9  ;;  %v487_v23 = vsel %vm481_vm12, %v484_v46, %v486_v56 }
  0x5c   : > { %v516_v17 = vadd.s32 %v514_v52, %v512_v12  ;;  %v760_v20 = vand.u32 2147483647, %v3696_v4  ;;  %v537_v24 = vadd.s32 %v533_v55, %v529_v50  ;;  %v775_v62 = vsub.s32 32, %v774_v6 }
  0x5d   : > { %vm239_vm4 = vcmp.lt.s32.totalorder %v238_v49, 0  ;;  %v240_v16 = vsub.s32 0, %v238_v49  ;;  %v539_v26 = vadd.s32 %v538_v18, %v528_v7  ;;  %vm3816_vm5 = vcmp.le.f32.partialorder %v136_v1, 0.7853982 }
  0x5e   : > { %v517_v22 = vadd.s32 %v516_v17, %v506_v11  ;;  %vm138_vm6 = vcmp.lt.s32.totalorder %v3684_v0, 0  ;;  %v541_v34 = vmul.u32 %v3728_v61, %v487_v23  ;;  %v260_v36 = vsub.s32 4, %v236_v51 }
  0x5f   : > { %v241_v21 = vsel %vm239_vm4, %v240_v16, %v238_v49  ;;  %v540_v30 = vadd.s32 %v539_v26, %v530_v14  ;;  %v767_v38 = vand.u32 8388607, %v760_v20  ;;  %v230_v39 = vadd.s32 %v3764_v2, %v3769_v10 }
  0x60   : > { %v242_v19 = vclz %v241_v21  ;;  %v518_v28 = vadd.s32 %v517_v22, %v508_v13  ;;  %v780_v1 = vshll.u32 %v3570_v27, %v774_v6  ;;  %v781_v44 = vshrl.u32 %v3571_v29, %v775_v62 }
  0x61   : > { %v544_v37 = vadd.s32 1, %v540_v30  ;;  %v783_v35 = vshll.u32 %v3571_v29, %v774_v6  ;;  %v784_v61 = vshrl.u32 %v3572_v31, %v775_v62  ;;  %v261_v53 = vsel %vm138_vm6, %v260_v36, %v236_v51 }
  0x62   : > { %v3352_v5 = vadd.s32 4294967294, %v242_v19  ;;  %vm543_vm7 = vc.u32 %v518_v28, %v537_v24  ;;  %v3833_v2 = vshrl.u32 %v3797_v40, 5  ;;  %v789_v10 = vshll.u32 %v3573_v33, %v774_v6 }
  0x63   : > { %v545_v45 = vsel %vm543_vm7, %v544_v37, %v540_v30  ;;  %v790_v54 = vshrl.u32 %v3574_v42, %v775_v62  ;;  %v786_v59 = vshll.u32 %v3572_v31, %v774_v6  ;;  %v787_v55 = vshrl.u32 %v3573_v33, %v775_v62 }
  0x64   : > { %vm3353_vm8 = vcmp.lt.s32.totalorder %v3352_v5, 0  ;;  %v546_v50 = vadd.s32 %v545_v45, %v541_v34  ;;  %v768_v63 = vor.u32 8388608, %v767_v38  ;;  %v777_v41 = vshll.u32 %v3569_v25, %v774_v6 }
  0x65   : > { %v245_v57 = vsel %vm3353_vm8, 0, %v3352_v5  ;;  %v778_v7 = vshrl.u32 %v3570_v27, %v775_v62  ;;  %v782_v40 = vor.u32 %v781_v44, %v780_v1  ;;  %v263_v11 = vsel %vm3816_vm5, 0, %v261_v53 }
  0x66   : > { %v246_v46 = vsub.s32 32, %v245_v57  ;;  %v247_v47 = vshll.u32 %v238_v49, %v245_v57  ;;  %v250_v48 = vsub.s32 4294967266, %v245_v57  ;;  %v547_v60 = vadd.s32 536870912, %v546_v50 }
  0x67   : > { %v785_v49 = vor.u32 %v784_v61, %v783_v35  ;;  %v791_v13 = vor.u32 %v790_v54, %v789_v10  ;;  %vm792_vm9 = vcmp.lt.s32.totalorder %v3833_v2, 1  ;;  %v788_v15 = vor.u32 %v787_v55, %v786_v59 }
  0x68   : > { %v248_v56 = vshrl.u32 %v230_v39, %v246_v46  ;;  %v251_v58 = vadd.s32 127, %v250_v48  ;;  %v548_v12 = vshrl.u32 %v547_v60, 30  ;;  %vm795_vm10 = vcmp.lt.s32.totalorder %v3833_v2, 4 }
  0x69   : > { %v779_v6 = vor.u32 %v778_v7, %v777_v41  ;;  %vm794_vm11 = vcmp.lt.s32.totalorder %v3833_v2, 3  ;;  %vm450_vm12 = vcmp.lt.s32.totalorder %v3693_v3, 0  ;;  %v776_v18 = vshrl.u32 %v3569_v25, %v775_v62 }
  0x6a   : > { %v249_v51 = vor.u32 %v248_v56, %v247_v47  ;;  %v252_v9 = vshll.u32 %v251_v58, 23  ;;  %v549_v16 = vshll.u32 %v548_v12, 30  ;;  %vm793_vm13 = vcmp.lt.s32.totalorder %v3833_v2, 2 }
  0x6b   : > { %v804_v23 = vsel %vm792_vm9, %v782_v40, %v785_v49  ;;  %v280_v21 = vadd.s32 3, %v263_v11  ;;  %v542_v22 = vadd.s32 %v537_v24, %v518_v28  ;;  %v805_v19 = vsel %vm795_vm10, %v791_v13, 1326507024 }
  0x6c   : > { %v253_v52 = vor.u32 4788187, %v252_v9  ;;  %v256_v14 = vcvt.s32.f32 %v249_v51  ;;  %v3851_v26 = vsub.s32 %v546_v50, %v549_v16  ;;  %v801_v5 = vsel %vm795_vm10, %v788_v15, 920167782 }
  0x6d   : > { %v806_v34 = vsel %vm794_vm11, %v788_v15, %v805_v19  ;;  %v3859_v62 = vshll.u32 %v768_v63, 8  ;;  %v800_v24 = vsel %vm792_vm9, %v779_v6, %v782_v40  ;;  %v572_v38 = vsub.s32 4, %v548_v12 }
  0x6e   : > { %v254_v17 = vand.u32 2147483647, %v253_v52  ;;  %vm551_vm14 = vcmp.lt.s32.totalorder %v3851_v26, 0  ;;  %v552_v36 = vsub.s32 0, %v3851_v26  ;;  %v807_v28 = vsel %vm793_vm13, %v804_v23, %v806_v34 }
  0x6f   : > { %v809_v39 = vand.u32 65535, %v3859_v62  ;;  %v811_v1 = vand.u32 65535, %v807_v28  ;;  %v802_v57 = vsel %vm794_vm11, %v785_v49, %v801_v5  ;;  %v3872_v45 = vshrl.u32 %v3859_v62, 16 }
  0x70   : > { %v257_v30 = vmul.f32 %v256_v14, %v254_v17  ;;  %v553_v44 = vsel %vm551_vm14, %v552_v36, %v3851_v26  ;;  %v812_v35 = vshrl.u32 %v807_v28, 16  ;;  %v3876_v46 = vand.u32 3, %v280_v21 }
  0x71   : > { %vm3880_vm15 = vcmp.le.f32.partialorder %v448_v8, 0.7853982  ;;  %v554_v48 = vclz %v553_v44  ;;  %v797_v50 = vsel %vm795_vm10, %v785_v49, 2102212464  ;;  %v3891_v10 = vand.u32 3, %v263_v11 }
  0x72   : > { %v258_v37 = vxor.u32 2147483648, %v257_v30  ;;  %v813_v54 = vmul.u32 %v811_v1, %v809_v39  ;;  %v3893_v56 = vmul.u32 %v812_v35, %v809_v39  ;;  %v796_v59 = vsel %vm792_vm9, %v776_v18, %v779_v6 }
  0x73   : > { %v3358_v58 = vadd.s32 4294967294, %v554_v48  ;;  %v803_v55 = vsel %vm793_vm13, %v800_v24, %v802_v57  ;;  %v573_v32 = vsel %vm450_vm12, %v572_v38, %v548_v12  ;;  %v798_v60 = vsel %vm794_vm11, %v782_v40, %v797_v50 }
  0x74   : > { %v259_v61 = vsel %vm138_vm6, %v258_v37, %v257_v30  ;;  %v3906_v63 = vmul.u32 %v811_v1, %v3872_v45  ;;  %v817_v41 = vshll.u32 %v3893_v56, 16  ;;  %v833_v9 = vand.u32 65535, %v803_v55 }
  0x75   : > { %v3889_v53 = vsel %vm3816_vm5, %v3684_v0, %v259_v61  ;;  %vm3359_vm0 = vcmp.lt.s32.totalorder %v3358_v58, 0  ;;  %v816_v11 = vmul.u32 %v812_v35, %v3872_v45  ;;  %v834_v13 = vshrl.u32 %v803_v55, 16 }
  0x76   : > { %v264_v8 = vmul.f32 %v3889_v53, %v3889_v53  ;;  %v557_v49 = vsel %vm3359_vm0, 0, %v3358_v58  ;;  %vm821_vm1 = vc.u32 %v813_v54, %v817_v41  ;;  %vm286_vm2 = vcmp.eq.s32.totalorder %v3876_v46, 2 }
  0x77   : > { %v558_v12 = vsub.s32 32, %v557_v49  ;;  %v559_v15 = vshll.u32 %v3851_v26, %v557_v49  ;;  %vm441_vm3 = vcmp.eq.s32.totalorder %v3891_v10, 2  ;;  %v562_v40 = vsub.s32 4294967266, %v557_v49 }
  0x78   : > { %v265_v7 = vmul.f32 -0.001358992, %v264_v8  ;;  %v272_v51 = vmul.f32 -0.00019511016, %v264_v8  ;;  %v819_v16 = vshll.u32 %v3906_v63, 16  ;;  %v822_v6 = vsel %vm821_vm1, 1, %v3575_v43 }
  0x79   : > { %v823_v17 = vadd.s32 %v817_v41, %v813_v54  ;;  %v560_v21 = vshrl.u32 %v542_v22, %v558_v12  ;;  %v3917_v19 = vsel %vm793_vm13, %v796_v59, %v798_v60  ;;  %vm283_vm4 = vcmp.eq.s32.totalorder %v3876_v46, 0 }
  0x7a   : > { %v266_v52 = vadd.f32 0.041655596, %v265_v7  ;;  %v273_v14 = vadd.f32 0.008332121, %v272_v51  ;;  %vm438_vm5 = vcmp.eq.s32.totalorder %v3891_v10, 0  ;;  %v563_v26 = vadd.s32 127, %v562_v40 }
  0x7b   : > { %v3923_v30 = vsel %vm3880_vm15, 0, %v573_v32  ;;  %v824_v5 = vadd.s32 %v822_v6, %v816_v11  ;;  %v836_v34 = vmul.u32 %v834_v13, %v809_v39  ;;  %vm282_vm6 = vcmp.lt.s32.totalorder %v3876_v46, 2 }
  0x7c   : > { %v267_v18 = vmul.f32 %v266_v52, %v264_v8  ;;  %v274_v23 = vmul.f32 %v273_v14, %v264_v8  ;;  %vm437_vm7 = vcmp.lt.s32.totalorder %v3891_v10, 2  ;;  %v561_v2 = vor.u32 %v560_v21, %v559_v15 }
  0x7d   : > { %v837_v22 = vmul.u32 %v833_v9, %v3872_v45  ;;  %vm279_vm8 = vweird.f32 %v3684_v0  ;;  %v564_v28 = vshll.u32 %v563_v26, 23  ;;  %v818_v37 = vshrl.u32 %v3893_v56, 16 }
  0x7e   : > { %v268_v36 = vadd.f32 -0.4999988, %v267_v18  ;;  %v275_v24 = vadd.f32 -0.16666654, %v274_v23  ;;  %vm825_vm9 = vc.u32 %v823_v17, %v819_v16  ;;  %v835_v38 = vmul.u32 %v833_v9, %v809_v39 }
  0x7f   : > { %v568_v57 = vcvt.s32.f32 %v561_v2  ;;  %v826_v35 = vsel %vm825_vm9, 1, %v3575_v43  ;;  %v565_v61 = vor.u32 4788187, %v564_v28  ;;  %v838_v50 = vmul.u32 %v834_v13, %v3872_v45 }
  0x80   : > { %v269_v1 = vmul.f32 %v268_v36, %v264_v8  ;;  %v276_v44 = vmul.f32 %v275_v24, %v264_v8  ;;  %v828_v48 = vadd.s32 %v826_v35, %v824_v5  ;;  %v839_v54 = vshll.u32 %v836_v34, 16 }
  0x81   : > { %v820_v55 = vshrl.u32 %v3906_v63, 16  ;;  %v841_v32 = vshll.u32 %v837_v22, 16  ;;  %v566_v60 = vand.u32 2147483647, %v565_v61  ;;  %v592_v56 = vadd.s32 3, %v3923_v30 }
  0x82   : > { %v270_v58 = vadd.f32 1.0, %v269_v1  ;;  %v277_v59 = vadd.f32 1.0, %v276_v44  ;;  %v829_v41 = vadd.s32 %v828_v48, %v818_v37  ;;  %vm843_vm10 = vc.u32 %v835_v38, %v839_v54 }
  0x83   : > { %v844_v7 = vsel %vm843_vm10, 1, %v3575_v43  ;;  %v845_v51 = vadd.s32 %v839_v54, %v835_v38  ;;  %v569_v9 = vmul.f32 %v568_v57, %v566_v60  ;;  %v840_v49 = vshrl.u32 %v836_v34, 16 }
  0x84   : > { %v278_v39 = vmul.f32 %v277_v59, %v3889_v53  ;;  %v287_v8 = vxor.u32 2147483648, %v270_v58  ;;  %v846_v45 = vadd.s32 %v844_v7, %v838_v50  ;;  %v3937_v11 = vmul.f32 8.0, %v3684_v0 }
  0x85   : > { %vm847_vm11 = vc.u32 %v845_v51, %v841_v32  ;;  %v570_v14 = vxor.u32 2147483648, %v569_v9  ;;  %v3943_v53 = vadd.s32 %v829_v41, %v820_v55  ;;  %v842_v12 = vshrl.u32 %v837_v22, 16 }
  0x86   : > { %v284_v13 = vxor.u32 2147483648, %v278_v39  ;;  %v288_v63 = vsel %vm286_vm2, %v287_v8, %v278_v39  ;;  %v443_v52 = vsel %vm441_vm3, %v287_v8, %v278_v39  ;;  %v848_v15 = vsel %vm847_vm11, 1, %v3575_v43 }
  0x87   : > { %v850_v6 = vadd.s32 %v848_v15, %v846_v45  ;;  %v1075_v17 = vand.u32 2139095040, %v3937_v11  ;;  %v571_v21 = vsel %vm450_vm12, %v570_v14, %v569_v9  ;;  %v3957_v26 = vadd.s32 %v845_v51, %v841_v32 }
  0x88   : > { %v285_v40 = vsel %vm283_vm4, %v270_v58, %v284_v13  ;;  %v440_v16 = vsel %vm438_vm5, %v270_v58, %v284_v13  ;;  %v574_v36 = vsel %vm3880_vm15, %v3693_v3, %v571_v21  ;;  %v853_v22 = vmul.u32 %v3859_v62, %v3917_v19 }
  0x89   : > { %v289_v18 = vsel %vm282_vm6, %v285_v40, %v288_v63  ;;  %v444_v23 = vsel %vm437_vm7, %v440_v16, %v443_v52  ;;  %v851_v46 = vadd.s32 %v850_v6, %v840_v49  ;;  %v576_v24 = vmul.f32 %v574_v36, %v574_v36 }
  0x8a   : > { %v290_v5 = vsel %vm279_vm8, nan, %v289_v18  ;;  %v445_v34 = vsel %vm279_vm8, nan, %v444_v23  ;;  %v1076_v10 = vshrl.u32 %v1075_v17, 23  ;;  %vm855_vm12 = vc.u32 %v3943_v53, %v3957_v26 }
  0x8b   : > { %291 = vst [vmem:[%s3686_s24 + $0x3] sm:$0x7] %v290_v5  ;;  %v852_v2 = vadd.s32 %v851_v46, %v842_v12  ;;  %v577_v28 = vmul.f32 -0.001358992, %v576_v24  ;;  %v584_v37 = vmul.f32 -0.00019511016, %v576_v24  ;;  %vm591_vm1 = vweird.f32 %v3693_v3 }
  0x8c   : > { %446 = vst [vmem:[%s3686_s24 + $0x6] sm:$0x7] %v445_v34  ;;  %v3369_v38 = vadd.s32 4294967169, %v1076_v10  ;;  %v3972_v1 = vand.u32 3, %v592_v56  ;;  %v1072_v47 = vand.u32 2147483647, %v3937_v11 }
  0x8d   : > { %v856_v44 = vadd.s32 1, %v852_v2  ;;  %v578_v57 = vadd.f32 0.041655596, %v577_v28  ;;  %v585_v35 = vadd.f32 0.008332121, %v584_v37  ;;  %v748_v48 = vand.u32 3, %v3923_v30 }
  0x8e   : > { %v1082_v61 = vadd.s32 1, %v3369_v38  ;;  %v3977_v54 = vmul.f32 16.0, %v3684_v0  ;;  %vm595_vm14 = vcmp.eq.s32.totalorder %v3972_v1, 0  ;;  %v3982_v59 = vand.u32 8388607, %v1072_v47 }
  0x8f   : > { %v857_v50 = vsel %vm855_vm12, %v856_v44, %v852_v2  ;;  %v579_v62 = vmul.f32 %v578_v57, %v576_v24  ;;  %v586_v19 = vmul.f32 %v585_v35, %v576_v24  ;;  %vm594_vm15 = vcmp.lt.s32.totalorder %v3972_v1, 2 }
  0x90   : > { %v858_v58 = vadd.s32 %v857_v50, %v853_v22  ;;  %vm1083_vm13 = vcmp.gt.s32.totalorder %v1082_v61, 0  ;;  %vm598_vm0 = vcmp.eq.s32.totalorder %v3972_v1, 2  ;;  %vm749_vm2 = vcmp.lt.s32.totalorder %v748_v48, 2 }
  0x91   : > { %v1084_v55 = vsel %vm1083_vm13, %v1082_v61, 0  ;;  %v580_v32 = vadd.f32 -0.4999988, %v579_v62  ;;  %v587_v60 = vadd.f32 -0.16666654, %v586_v19  ;;  %vm750_vm3 = vcmp.eq.s32.totalorder %v748_v48, 0 }
  0x92   : > { %v859_v30 = vadd.s32 536870912, %v858_v58  ;;  %vm753_vm4 = vcmp.eq.s32.totalorder %v748_v48, 2  ;;  %v1086_v56 = vand.u32 31, %v1084_v55  ;;  %v1387_v7 = vand.u32 2139095040, %v3977_v54 }
  0x93   : > { %v581_v41 = vmul.f32 %v580_v32, %v576_v24  ;;  %v588_v39 = vmul.f32 %v587_v60, %v576_v24  ;;  %v3988_v51 = vshrl.u32 %v1084_v55, 5  ;;  %v1080_v14 = vor.u32 8388608, %v3982_v59 }
  0x94   : > { %v860_v8 = vshrl.u32 %v859_v30, 30  ;;  %v3990_v9 = vsub.s32 32, %v1086_v56  ;;  %v1089_v49 = vshll.u32 %v3569_v25, %v1086_v56  ;;  %v1092_v45 = vshll.u32 %v3570_v27, %v1086_v56 }
  0x95   : > { %v582_v13 = vadd.f32 1.0, %v581_v41  ;;  %v589_v63 = vadd.f32 1.0, %v588_v39  ;;  %v1095_v40 = vshll.u32 %v3571_v29, %v1086_v56  ;;  %v1384_v16 = vand.u32 2147483647, %v3977_v54 }
  0x96   : > { %v861_v52 = vshll.u32 %v860_v8, 30  ;;  %v1090_v12 = vshrl.u32 %v3570_v27, %v3990_v9  ;;  %v1093_v15 = vshrl.u32 %v3571_v29, %v3990_v9  ;;  %v1096_v23 = vshrl.u32 %v3572_v31, %v3990_v9 }
  0x97   : > { %v590_v6 = vmul.f32 %v589_v63, %v574_v36  ;;  %v599_v17 = vxor.u32 2147483648, %v582_v13  ;;  %vm1104_vm5 = vcmp.lt.s32.totalorder %v3988_v51, 1  ;;  %v1388_v34 = vshrl.u32 %v1387_v7, 23 }
  0x98   : > { %v4001_v18 = vsub.s32 %v858_v58, %v861_v52  ;;  %v4005_v21 = vor.u32 %v1090_v12, %v1089_v49  ;;  %v4007_v5 = vor.u32 %v1093_v15, %v1092_v45  ;;  %v1098_v2 = vshll.u32 %v3572_v31, %v1086_v56 }
  0x99   : > { %v596_v46 = vxor.u32 2147483648, %v590_v6  ;;  %v600_v24 = vsel %vm598_vm0, %v599_v17, %v590_v6  ;;  %v755_v10 = vsel %vm753_vm4, %v599_v17, %v590_v6  ;;  %v1099_v22 = vshrl.u32 %v3573_v33, %v3990_v9 }
  0x9a   : > { %vm863_vm6 = vcmp.lt.s32.totalorder %v4001_v18, 0  ;;  %v864_v36 = vsub.s32 0, %v4001_v18  ;;  %v1101_v28 = vshll.u32 %v3573_v33, %v1086_v56  ;;  %v1097_v44 = vor.u32 %v1096_v23, %v1095_v40 }
  0x9b   : > { %v597_v37 = vsel %vm595_vm14, %v582_v13, %v596_v46  ;;  %v752_v38 = vsel %vm750_vm3, %v582_v13, %v596_v46  ;;  %v1102_v57 = vshrl.u32 %v3574_v42, %v3990_v9  ;;  %v1100_v62 = vor.u32 %v1099_v22, %v1098_v2 }
  0x9c   : > { %v601_v35 = vsel %vm594_vm15, %v597_v37, %v600_v24  ;;  %v756_v61 = vsel %vm749_vm2, %v752_v38, %v755_v10  ;;  %v865_v50 = vsel %vm863_vm6, %v864_v36, %v4001_v18  ;;  %v884_v32 = vsub.s32 4, %v860_v8 }
  0x9d   : > { %v602_v19 = vsel %vm591_vm1, nan, %v601_v35  ;;  %v757_v58 = vsel %vm591_vm1, nan, %v756_v61  ;;  %v866_v59 = vclz %v865_v50  ;;  %v1103_v55 = vor.u32 %v1102_v57, %v1101_v28 }
  0x9e   : > { %603 = vst [vmem:[%s3686_s24 + $0x9] sm:$0x7] %v602_v19  ;;  %vm1106_vm7 = vcmp.lt.s32.totalorder %v3988_v51, 3  ;;  %vm1107_vm8 = vcmp.lt.s32.totalorder %v3988_v51, 4  ;;  %vm762_vm9 = vcmp.lt.s32.totalorder %v3696_v4, 0  ;;  %vm1105_vm10 = vcmp.lt.s32.totalorder %v3988_v51, 2 }
  0x9f   : > { %758 = vst [vmem:[%s3686_s24 + $0xc] sm:$0x7] %v757_v58  ;;  %v3364_v1 = vadd.s32 4294967294, %v866_v59  ;;  %v1112_v3 = vsel %vm1104_vm5, %v4005_v21, %v4007_v5  ;;  %v854_v48 = vadd.s32 %v3957_v26, %v3943_v53  ;;  %v1113_v60 = vsel %vm1107_vm8, %v1100_v62, 920167782 }
  0xa0   : > { %v1117_v30 = vsel %vm1107_vm8, %v1103_v55, 1326507024  ;;  %v4048_v56 = vshll.u32 %v1080_v14, 8  ;;  %v1114_v41 = vsel %vm1106_vm7, %v1097_v44, %v1113_v60  ;;  %v3375_v39 = vadd.s32 4294967169, %v1388_v34 }
  0xa1   : > { %vm3365_vm11 = vcmp.lt.s32.totalorder %v3364_v1, 0  ;;  %v4054_v7 = vand.u32 8388607, %v1384_v16  ;;  %v885_v53 = vsel %vm762_vm9, %v884_v32, %v860_v8  ;;  %v1115_v26 = vsel %vm1105_vm10, %v1112_v3, %v1114_v41 }
  0xa2   : > { %v869_v49 = vsel %vm3365_vm11, 0, %v3364_v1  ;;  %v1116_v45 = vsel %vm1104_vm5, %v4007_v5, %v1097_v44  ;;  %v1118_v14 = vsel %vm1106_vm7, %v1100_v62, %v1117_v30  ;;  %vm4068_vm12 = vcmp.le.f32.partialorder %v760_v20, 0.7853982 }
  0xa3   : > { %v870_v13 = vsub.s32 32, %v869_v49  ;;  %v871_v63 = vshll.u32 %v4001_v18, %v869_v49  ;;  %v874_v52 = vsub.s32 4294967266, %v869_v49  ;;  %v1088_v8 = vshrl.u32 %v3569_v25, %v3990_v9 }
  0xa4   : > { %v1121_v15 = vand.u32 65535, %v4048_v56  ;;  %v1122_v40 = vshrl.u32 %v4048_v56, 16  ;;  %v1392_v18 = vor.u32 8388608, %v4054_v7  ;;  %v1394_v23 = vadd.s32 1, %v3375_v39 }
  0xa5   : > { %v872_v6 = vshrl.u32 %v854_v48, %v870_v13  ;;  %v875_v17 = vadd.s32 127, %v874_v52  ;;  %v887_v34 = vsel %vm4068_vm12, 0, %v885_v53  ;;  %v1119_v20 = vsel %vm1105_vm10, %v1116_v45, %v1118_v14 }
  0xa6   : > { %v1145_v46 = vand.u32 65535, %v1115_v26  ;;  %v1146_v24 = vshrl.u32 %v1115_v26, 16  ;;  %v1123_v9 = vand.u32 65535, %v1119_v20  ;;  %v1124_v2 = vshrl.u32 %v1119_v20, 16 }
  0xa7   : > { %v873_v10 = vor.u32 %v872_v6, %v871_v63  ;;  %v876_v36 = vshll.u32 %v875_v17, 23  ;;  %v1108_v22 = vsel %vm1104_vm5, %v1088_v8, %v4005_v21  ;;  %v1109_v28 = vsel %vm1107_vm8, %v1097_v44, 2102212464 }
  0xa8   : > { %v1148_v37 = vmul.u32 %v1146_v24, %v1121_v15  ;;  %v1149_v38 = vmul.u32 %v1145_v46, %v1122_v40  ;;  %v1147_v61 = vmul.u32 %v1145_v46, %v1121_v15  ;;  %vm1395_vm13 = vcmp.gt.s32.totalorder %v1394_v23, 0 }
  0xa9   : > { %v877_v57 = vor.u32 4788187, %v876_v36  ;;  %v880_v35 = vcvt.s32.f32 %v873_v10  ;;  %v904_v50 = vadd.s32 3, %v887_v34  ;;  %v1125_v62 = vmul.u32 %v1123_v9, %v1121_v15 }
  0xaa   : > { %v1126_v19 = vmul.u32 %v1124_v2, %v1121_v15  ;;  %v1127_v58 = vmul.u32 %v1123_v9, %v1122_v40  ;;  %v1150_v55 = vmul.u32 %v1146_v24, %v1122_v40  ;;  %v1151_v32 = vshll.u32 %v1148_v37, 16 }
  0xab   : > { %v878_v59 = vand.u32 2147483647, %v877_v57  ;;  %v1153_v1 = vshll.u32 %v1149_v38, 16  ;;  %v1110_v21 = vsel %vm1106_vm7, %v4007_v5, %v1109_v28  ;;  %v1128_v3 = vmul.u32 %v1124_v2, %v1122_v40 }
  0xac   : > { %v1129_v44 = vshll.u32 %v1126_v19, 16  ;;  %v1131_v48 = vshll.u32 %v1127_v58, 16  ;;  %v1152_v30 = vshrl.u32 %v1148_v37, 16  ;;  %vm1155_vm14 = vc.u32 %v1147_v61, %v1151_v32 }
  0xad   : > { %v881_v60 = vmul.f32 %v880_v35, %v878_v59  ;;  %v1157_v41 = vadd.s32 %v1151_v32, %v1147_v61  ;;  %v1156_v49 = vsel %vm1155_vm14, 1, %v3575_v43  ;;  %v1396_v53 = vsel %vm1395_vm13, %v1394_v23, 0 }
  0xae   : > { %vm1133_vm15 = vc.u32 %v1125_v62, %v1129_v44  ;;  %v1135_v39 = vadd.s32 %v1129_v44, %v1125_v62  ;;  %v1158_v13 = vadd.s32 %v1156_v49, %v1150_v55  ;;  %v1130_v63 = vshrl.u32 %v1126_v19, 16 }
  0xaf   : > { %v882_v26 = vxor.u32 2147483648, %v881_v60  ;;  %v1134_v45 = vsel %vm1133_vm15, 1, %v3575_v43  ;;  %vm1159_vm0 = vc.u32 %v1157_v41, %v1153_v1  ;;  %v1154_v15 = vshrl.u32 %v1149_v38, 16 }
  0xb0   : > { %v1136_v5 = vadd.s32 %v1134_v45, %v1128_v3  ;;  %vm1137_vm1 = vc.u32 %v1135_v39, %v1131_v48  ;;  %v1160_v52 = vsel %vm1159_vm0, 1, %v3575_v43  ;;  %v1132_v17 = vshrl.u32 %v1127_v58, 16 }
  0xb1   : > { %v883_v14 = vsel %vm762_vm9, %v882_v26, %v881_v60  ;;  %v1138_v8 = vsel %vm1137_vm1, 1, %v3575_v43  ;;  %v1162_v40 = vadd.s32 %v1160_v52, %v1158_v13  ;;  %v1398_v20 = vand.u32 31, %v1396_v53 }
  0xb2   : > { %v4099_v6 = vsel %vm4068_vm12, %v3696_v4, %v883_v14  ;;  %v1140_v23 = vadd.s32 %v1138_v8, %v1136_v5  ;;  %v4103_v24 = vand.u32 3, %v904_v50  ;;  %v1111_v10 = vsel %vm1105_vm10, %v1108_v22, %v1110_v21 }
  0xb3   : > { %v888_v46 = vmul.f32 %v4099_v6, %v4099_v6  ;;  %v1163_v36 = vadd.s32 %v1162_v40, %v1152_v30  ;;  %v4107_v9 = vand.u32 3, %v887_v34  ;;  %v4109_v28 = vadd.s32 %v1157_v41, %v1153_v1 }
  0xb4   : > { %v1141_v2 = vadd.s32 %v1140_v23, %v1130_v63  ;;  %v4111_v12 = vsub.s32 32, %v1398_v20  ;;  %v4113_v35 = vshrl.u32 %v1396_v53, 5  ;;  %v1165_v50 = vmul.u32 %v4048_v56, %v1111_v10 }
  0xb5   : > { %v889_v37 = vmul.f32 -0.001358992, %v888_v46  ;;  %v896_v38 = vmul.f32 -0.00019511016, %v888_v46  ;;  %v1164_v57 = vadd.s32 %v1163_v36, %v1154_v15  ;;  %v1401_v51 = vshll.u32 %v3569_v25, %v1398_v20 }
  0xb6   : > { %v4115_v61 = vadd.s32 %v1141_v2, %v1132_v17  ;;  %v1404_v22 = vshll.u32 %v3570_v27, %v1398_v20  ;;  %v1402_v58 = vshrl.u32 %v3570_v27, %v4111_v12  ;;  %v1405_v59 = vshrl.u32 %v3571_v29, %v4111_v12 }
  0xb7   : > { %v890_v34 = vadd.f32 0.041655596, %v889_v37  ;;  %v897_v62 = vadd.f32 0.008332121, %v896_v38  ;;  %v1168_v19 = vadd.s32 1, %v1164_v57  ;;  %v1407_v55 = vshll.u32 %v3571_v29, %v1398_v20 }
  0xb8   : > { %vm1167_vm2 = vc.u32 %v4115_v61, %v4109_v28  ;;  %v1408_v56 = vshrl.u32 %v3572_v31, %v4111_v12  ;;  %vm1416_vm3 = vcmp.lt.s32.totalorder %v4113_v35, 1  ;;  %v1410_v44 = vshll.u32 %v3572_v31, %v1398_v20 }
  0xb9   : > { %v891_v32 = vmul.f32 %v890_v34, %v888_v46  ;;  %v898_v1 = vmul.f32 %v897_v62, %v888_v46  ;;  %v1169_v21 = vsel %vm1167_vm2, %v1168_v19, %v1164_v57  ;;  %v1411_v48 = vshrl.u32 %v3573_v33, %v4111_v12 }
  0xba   : > { %v1170_v3 = vadd.s32 %v1169_v21, %v1165_v50  ;;  %v1413_v60 = vshll.u32 %v3573_v33, %v1398_v20  ;;  %vm906_vm4 = vcmp.lt.s32.totalorder %v4103_v24, 2  ;;  %v4135_v39 = vor.u32 %v1402_v58, %v1401_v51 }
  0xbb   : > { %v892_v30 = vadd.f32 -0.4999988, %v891_v32  ;;  %v899_v41 = vadd.f32 -0.16666654, %v898_v1  ;;  %v1414_v49 = vshrl.u32 %v3574_v42, %v4111_v12  ;;  %vm903_vm5 = vweird.f32 %v3696_v4 }
  0xbc   : > { %v1171_v53 = vadd.s32 536870912, %v1170_v3  ;;  %v4140_v26 = vor.u32 %v1405_v59, %v1404_v22  ;;  %v1409_v45 = vor.u32 %v1408_v56, %v1407_v55  ;;  %v1412_v13 = vor.u32 %v1411_v48, %v1410_v44 }
  0xbd   : > { %v893_v63 = vmul.f32 %v892_v30, %v888_v46  ;;  %v900_v5 = vmul.f32 %v899_v41, %v888_v46  ;;  %vm1418_vm6 = vcmp.lt.s32.totalorder %v4113_v35, 3  ;;  %vm1419_vm7 = vcmp.lt.s32.totalorder %v4113_v35, 4 }
  0xbe   : > { %vm910_vm8 = vcmp.eq.s32.totalorder %v4103_v24, 2  ;;  %vm1065_vm9 = vcmp.eq.s32.totalorder %v4107_v9, 2  ;;  %v4146_v52 = vshrl.u32 %v1171_v53, 30  ;;  %v1415_v14 = vor.u32 %v1414_v49, %v1413_v60 }
  0xbf   : > { %v894_v8 = vadd.f32 1.0, %v893_v63  ;;  %v901_v15 = vadd.f32 1.0, %v900_v5  ;;  %v1425_v40 = vsel %vm1419_vm7, %v1412_v13, 920167782  ;;  %v4152_v17 = vshll.u32 %v1392_v18, 8 }
  0xc0   : > { %v1173_v23 = vshll.u32 %v4146_v52, 30  ;;  %vm1417_vm10 = vcmp.lt.s32.totalorder %v4113_v35, 2  ;;  %v1424_v20 = vsel %vm1416_vm3, %v4135_v39, %v4140_v26  ;;  %v1426_v46 = vsel %vm1418_vm6, %v1409_v45, %v1425_v40 }
  0xc1   : > { %v902_v10 = vmul.f32 %v901_v15, %v4099_v6  ;;  %vm907_vm11 = vcmp.eq.s32.totalorder %v4103_v24, 0  ;;  %v911_v36 = vxor.u32 2147483648, %v894_v8  ;;  %vm1062_vm12 = vcmp.eq.s32.totalorder %v4107_v9, 0 }
  0xc2   : > { %vm1061_vm13 = vcmp.lt.s32.totalorder %v4107_v9, 2  ;;  %v1174_v7 = vsub.s32 %v1170_v3, %v1173_v23  ;;  %v1428_v18 = vsel %vm1416_vm3, %v4140_v26, %v1409_v45  ;;  %v1429_v2 = vsel %vm1419_vm7, %v1415_v14, 1326507024 }
  0xc3   : > { %v908_v37 = vxor.u32 2147483648, %v902_v10  ;;  %v912_v38 = vsel %vm910_vm8, %v911_v36, %v902_v10  ;;  %v1067_v6 = vsel %vm1065_vm9, %v911_v36, %v902_v10  ;;  %v1427_v57 = vsel %vm1417_vm10, %v1424_v20, %v1426_v46 }
  0xc4   : > { %vm1175_vm14 = vcmp.lt.s32.totalorder %v1174_v7, 0  ;;  %v1176_v50 = vsub.s32 0, %v1174_v7  ;;  %v1430_v51 = vsel %vm1418_vm6, %v1412_v13, %v1429_v2  ;;  %v1433_v22 = vand.u32 65535, %v4152_v17 }
  0xc5   : > { %v909_v34 = vsel %vm907_vm11, %v894_v8, %v908_v37  ;;  %v1064_v62 = vsel %vm1062_vm12, %v894_v8, %v908_v37  ;;  %v1431_v19 = vsel %vm1417_vm10, %v1428_v18, %v1430_v51  ;;  %v1434_v58 = vshrl.u32 %v4152_v17, 16 }
  0xc6   : > { %v913_v59 = vsel %vm906_vm4, %v909_v34, %v912_v38  ;;  %v1068_v55 = vsel %vm1061_vm13, %v1064_v62, %v1067_v6  ;;  %v1177_v56 = vsel %vm1175_vm14, %v1176_v50, %v1174_v7  ;;  %v1435_v32 = vand.u32 65535, %v1431_v19 }
  0xc7   : > { %v914_v1 = vsel %vm903_vm5, nan, %v913_v59  ;;  %v1069_v21 = vsel %vm903_vm5, nan, %v1068_v55  ;;  %v1178_v3 = vclz %v1177_v56  ;;  %v1436_v44 = vshrl.u32 %v1431_v19, 16 }
  0xc8   : > { %915 = vst [vmem:[%s3686_s24 + $0xf] sm:$0x7] %v914_v1  ;;  %v1457_v48 = vand.u32 65535, %v1427_v57  ;;  %v1458_v60 = vshrl.u32 %v1427_v57, 16  ;;  %v1437_v24 = vmul.u32 %v1435_v32, %v1433_v22  ;;  %v1400_v9 = vshrl.u32 %v3569_v25, %v4111_v12 }
  0xc9   : > { %1070 = vst [vmem:[%s3686_s24 + $0x12] sm:$0x7] %v1069_v21  ;;  %v3370_v30 = vadd.s32 4294967294, %v1178_v3  ;;  %v1438_v41 = vmul.u32 %v1436_v44, %v1433_v22  ;;  %v1439_v49 = vmul.u32 %v1435_v32, %v1434_v58  ;;  %v1166_v53 = vadd.s32 %v4109_v28, %v4115_v61 }
  0xca   : > { %v1421_v4 = vsel %vm1419_vm7, %v1409_v45, 2102212464  ;;  %vm1074_vm0 = vcmp.lt.s32.totalorder %v3937_v11, 0  ;;  %v1440_v5 = vmul.u32 %v1436_v44, %v1434_v58  ;;  %v1460_v14 = vmul.u32 %v1458_v60, %v1433_v22 }
  0xcb   : > { %vm3371_vm15 = vcmp.lt.s32.totalorder %v3370_v30, 0  ;;  %v1441_v13 = vshll.u32 %v1438_v41, 16  ;;  %v1461_v8 = vmul.u32 %v1457_v48, %v1434_v58  ;;  %v1420_v12 = vsel %vm1416_vm3, %v1400_v9, %v4135_v39 }
  0xcc   : > { %v1181_v63 = vsel %vm3371_vm15, 0, %v3370_v30  ;;  %v1422_v28 = vsel %vm1418_vm6, %v4140_v26, %v1421_v4  ;;  %v1443_v61 = vshll.u32 %v1439_v49, 16  ;;  %v1459_v45 = vmul.u32 %v1457_v48, %v1433_v22 }
  0xcd   : > { %v1182_v15 = vsub.s32 32, %v1181_v63  ;;  %v1183_v40 = vshll.u32 %v1174_v7, %v1181_v63  ;;  %v1186_v23 = vsub.s32 4294967266, %v1181_v63  ;;  %vm1445_vm1 = vc.u32 %v1437_v24, %v1441_v13 }
  0xce   : > { %v1196_v10 = vsub.s32 4, %v4146_v52  ;;  %v1444_v36 = vshrl.u32 %v1439_v49, 16  ;;  %v1446_v18 = vsel %vm1445_vm1, 1, %v3575_v43  ;;  %v1447_v7 = vadd.s32 %v1441_v13, %v1437_v24 }
  0xcf   : > { %v1184_v20 = vshrl.u32 %v1166_v53, %v1182_v15  ;;  %v1187_v46 = vadd.s32 127, %v1186_v23  ;;  %v1462_v2 = vmul.u32 %v1458_v60, %v1434_v58  ;;  %v1463_v37 = vshll.u32 %v1460_v14, 16 }
  0xd0   : > { %v1448_v57 = vadd.s32 %v1446_v18, %v1440_v5  ;;  %v1465_v39 = vshll.u32 %v1461_v8, 16  ;;  %v1442_v50 = vshrl.u32 %v1438_v41, 16  ;;  %vm1449_vm2 = vc.u32 %v1447_v7, %v1443_v61 }
  0xd1   : > { %v1185_v38 = vor.u32 %v1184_v20, %v1183_v40  ;;  %v1188_v6 = vshll.u32 %v1187_v46, 23  ;;  %vm1467_vm3 = vc.u32 %v1459_v45, %v1463_v37  ;;  %v1469_v26 = vadd.s32 %v1463_v37, %v1459_v45 }
  0xd2   : > { %v1450_v34 = vsel %vm1449_vm2, 1, %v3575_v43  ;;  %v1468_v62 = vsel %vm1467_vm3, 1, %v3575_v43  ;;  %v1464_v59 = vshrl.u32 %v1460_v14, 16  ;;  %v1197_v56 = vsel %vm1074_vm0, %v1196_v10, %v4146_v52 }
  0xd3   : > { %v1189_v51 = vor.u32 4788187, %v1188_v6  ;;  %v1192_v22 = vcvt.s32.f32 %v1185_v38  ;;  %v1452_v19 = vadd.s32 %v1450_v34, %v1448_v57  ;;  %v1470_v55 = vadd.s32 %v1468_v62, %v1462_v2 }
  0xd4   : > { %vm1471_vm4 = vc.u32 %v1469_v26, %v1465_v39  ;;  %v4215_v1 = vmul.f32 32.0, %v3684_v0  ;;  %v1466_v3 = vshrl.u32 %v1461_v8, 16  ;;  %v4218_v48 = vmul.f32 64.0, %v3684_v0 }
  0xd5   : > { %v1190_v58 = vand.u32 2147483647, %v1189_v51  ;;  %v1472_v32 = vsel %vm1471_vm4, 1, %v3575_v43  ;;  %v1453_v21 = vadd.s32 %v1452_v19, %v1442_v50  ;;  %v1473_v30 = vadd.s32 %v1469_v26, %v1465_v39 }
  0xd6   : > { %v1474_v44 = vadd.s32 %v1472_v32, %v1470_v55  ;;  %v1696_v24 = vand.u32 2147483647, %v4215_v1  ;;  %v1699_v41 = vand.u32 2139095040, %v4215_v1  ;;  %vm1073_vm5 = vcmp.le.f32.partialorder %v1072_v47, 0.7853982 }
  0xd7   : > { %v1193_v60 = vmul.f32 %v1192_v22, %v1190_v58  ;;  %v1423_v52 = vsel %vm1417_vm10, %v1420_v12, %v1422_v28  ;;  %v1454_v9 = vadd.s32 %v1453_v21, %v1444_v36  ;;  %v1199_v4 = vsel %vm1073_vm5, 0, %v1197_v56 }
  0xd8   : > { %v1475_v49 = vadd.s32 %v1474_v44, %v1464_v59  ;;  %v1700_v13 = vshrl.u32 %v1699_v41, 23  ;;  %v1703_v5 = vand.u32 8388607, %v1696_v24  ;;  %v2011_v14 = vand.u32 2139095040, %v4218_v48 }
  0xd9   : > { %v1194_v53 = vxor.u32 2147483648, %v1193_v60  ;;  %v1477_v15 = vmul.u32 %v4152_v17, %v1423_v52  ;;  %vm1479_vm6 = vc.u32 %v1454_v9, %v1473_v30  ;;  %v1216_v40 = vadd.s32 3, %v1199_v4 }
  0xda   : > { %v1476_v63 = vadd.s32 %v1475_v49, %v1466_v3  ;;  %v3381_v47 = vadd.s32 4294967169, %v1700_v13  ;;  %v1704_v45 = vor.u32 8388608, %v1703_v5  ;;  %v2012_v20 = vshrl.u32 %v2011_v14, 23 }
  0xdb   : > { %v1195_v8 = vsel %vm1074_vm0, %v1194_v53, %v1193_v60  ;;  %v4233_v18 = vand.u32 3, %v1216_v40  ;;  %v4235_v7 = vand.u32 3, %v1199_v4  ;;  %v2008_v39 = vand.u32 2147483647, %v4218_v48 }
  0xdc   : > { %v1198_v35 = vsel %vm1073_vm5, %v3937_v11, %v1195_v8  ;;  %v1480_v23 = vadd.s32 1, %v1476_v63  ;;  %v1706_v28 = vadd.s32 1, %v3381_v47  ;;  %v4237_v57 = vshll.u32 %v1704_v45, 8 }
  0xdd   : > { %v1200_v12 = vmul.f32 %v1198_v35, %v1198_v35  ;;  %v3387_v50 = vadd.s32 4294967169, %v2012_v20  ;;  %vm1386_vm8 = vcmp.lt.s32.totalorder %v3977_v54, 0  ;;  %vm1219_vm9 = vcmp.eq.s32.totalorder %v4233_v18, 0 }
  0xde   : > { %v1481_v61 = vsel %vm1479_vm6, %v1480_v23, %v1476_v63  ;;  %vm1707_vm7 = vcmp.gt.s32.totalorder %v1706_v28, 0  ;;  %vm1222_vm10 = vcmp.eq.s32.totalorder %v4233_v18, 2  ;;  %vm1374_vm11 = vcmp.eq.s32.totalorder %v4235_v7, 0 }
  0xdf   : > { %v1201_v46 = vmul.f32 -0.001358992, %v1200_v12  ;;  %v1208_v10 = vmul.f32 -0.00019511016, %v1200_v12  ;;  %v1482_v36 = vadd.s32 %v1481_v61, %v1477_v15  ;;  %v1708_v17 = vsel %vm1707_vm7, %v1706_v28, 0 }
  0xe0   : > { %v1710_v6 = vand.u32 31, %v1708_v17  ;;  %vm1377_vm12 = vcmp.eq.s32.totalorder %v4235_v7, 2  ;;  %vm1218_vm13 = vcmp.lt.s32.totalorder %v4233_v18, 2  ;;  %vm1373_vm14 = vcmp.lt.s32.totalorder %v4235_v7, 2 }
  0xe1   : > { %v1202_v2 = vadd.f32 0.041655596, %v1201_v46  ;;  %v1209_v37 = vadd.f32 0.008332121, %v1208_v10  ;;  %v1483_v38 = vadd.s32 536870912, %v1482_v36  ;;  %v1478_v59 = vadd.s32 %v1473_v30, %v1454_v9 }
  0xe2   : > { %vm4249_vm15 = vcmp.le.f32.partialorder %v1384_v16, 0.7853982  ;;  %vm1215_vm0 = vweird.f32 %v3937_v11  ;;  %v1711_v58 = vsub.s32 32, %v1710_v6  ;;  %v4255_v56 = vand.u32 65535, %v4237_v57 }
  0xe3   : > { %v1203_v26 = vmul.f32 %v1202_v2, %v1200_v12  ;;  %v1210_v51 = vmul.f32 %v1209_v37, %v1200_v12  ;;  %v1484_v22 = vshrl.u32 %v1483_v38, 30  ;;  %v4259_v32 = vand.u32 8388607, %v2008_v39 }
  0xe4   : > { %v4261_v21 = vadd.s32 1, %v3387_v50  ;;  %v4263_v41 = vshrl.u32 %v1708_v17, 5  ;;  %v1713_v30 = vshll.u32 %v3569_v25, %v1710_v6  ;;  %v1716_v52 = vshll.u32 %v3570_v27, %v1710_v6 }
  0xe5   : > { %v1204_v34 = vadd.f32 -0.4999988, %v1203_v26  ;;  %v1211_v62 = vadd.f32 -0.16666654, %v1210_v51  ;;  %v1485_v55 = vshll.u32 %v1484_v22, 30  ;;  %v1508_v60 = vsub.s32 4, %v1484_v22 }
  0xe6   : > { %v4268_v9 = vshrl.u32 %v4237_v57, 16  ;;  %v1714_v13 = vshrl.u32 %v3570_v27, %v1711_v58  ;;  %v1717_v63 = vshrl.u32 %v3571_v29, %v1711_v58  ;;  %v1719_v5 = vshll.u32 %v3571_v29, %v1710_v6 }
  0xe7   : > { %v1205_v3 = vmul.f32 %v1204_v34, %v1200_v12  ;;  %v1212_v44 = vmul.f32 %v1211_v62, %v1200_v12  ;;  %v1486_v16 = vsub.s32 %v1482_v36, %v1485_v55  ;;  %v1720_v14 = vshrl.u32 %v3572_v31, %v1711_v58 }
  0xe8   : > { %v1509_v40 = vsel %vm1386_vm8, %v1508_v60, %v1484_v22  ;;  %v1722_v12 = vshll.u32 %v3572_v31, %v1710_v6  ;;  %v1723_v28 = vshrl.u32 %v3573_v33, %v1711_v58  ;;  %v1725_v61 = vshll.u32 %v3573_v33, %v1710_v6 }
  0xe9   : > { %v1206_v49 = vadd.f32 1.0, %v1205_v3  ;;  %v1213_v53 = vadd.f32 1.0, %v1212_v44  ;;  %vm1487_vm1 = vcmp.lt.s32.totalorder %v1486_v16, 0  ;;  %v1488_v4 = vsub.s32 0, %v1486_v16 }
  0xea   : > { %v1511_v36 = vsel %vm4249_vm15, 0, %v1509_v40  ;;  %v1715_v17 = vor.u32 %v1714_v13, %v1713_v30  ;;  %vm1728_vm2 = vcmp.lt.s32.totalorder %v4263_v41, 1  ;;  %v1718_v38 = vor.u32 %v1717_v63, %v1716_v52 }
  0xeb   : > { %v1214_v8 = vmul.f32 %v1213_v53, %v1198_v35  ;;  %v1223_v15 = vxor.u32 2147483648, %v1206_v49  ;;  %v1489_v47 = vsel %vm1487_vm1, %v1488_v4, %v1486_v16  ;;  %v1726_v35 = vshrl.u32 %v3574_v42, %v1711_v58 }
  0xec   : > { %v1490_v23 = vclz %v1489_v47  ;;  %v1721_v6 = vor.u32 %v1720_v14, %v1719_v5  ;;  %v1724_v51 = vor.u32 %v1723_v28, %v1722_v12  ;;  %vm1731_vm4 = vcmp.lt.s32.totalorder %v4263_v41, 4 }
  0xed   : > { %v1220_v45 = vxor.u32 2147483648, %v1214_v8  ;;  %v1224_v20 = vsel %vm1222_vm10, %v1223_v15, %v1214_v8  ;;  %v1379_v46 = vsel %vm1377_vm12, %v1223_v15, %v1214_v8  ;;  %v1727_v55 = vor.u32 %v1726_v35, %v1725_v61 }
  0xee   : > { %v3376_v10 = vadd.s32 4294967294, %v1490_v23  ;;  %v1712_v18 = vshrl.u32 %v3569_v25, %v1711_v58  ;;  %vm1729_vm5 = vcmp.lt.s32.totalorder %v4263_v41, 2  ;;  %vm1730_vm6 = vcmp.lt.s32.totalorder %v4263_v41, 3 }
  0xef   : > { %v1221_v2 = vsel %vm1219_vm9, %v1206_v49, %v1220_v45  ;;  %v1376_v37 = vsel %vm1374_vm11, %v1206_v49, %v1220_v45  ;;  %vm2019_vm7 = vcmp.gt.s32.totalorder %v4261_v21, 0  ;;  %v1733_v30 = vsel %vm1731_vm4, %v1721_v6, 2102212464 }
  0xf0   : > { %v1225_v50 = vsel %vm1218_vm13, %v1221_v2, %v1224_v20  ;;  %v1380_v26 = vsel %vm1373_vm14, %v1376_v37, %v1379_v46  ;;  %vm3377_vm3 = vcmp.lt.s32.totalorder %v3376_v10, 0  ;;  %v1736_v52 = vsel %vm1728_vm2, %v1715_v17, %v1718_v38 }
  0xf1   : > { %v1226_v22 = vsel %vm1215_vm0, nan, %v1225_v50  ;;  %v1381_v34 = vsel %vm1215_vm0, nan, %v1380_v26  ;;  %v1493_v62 = vsel %vm3377_vm3, 0, %v3376_v10  ;;  %v1528_v49 = vadd.s32 3, %v1511_v36 }
  0xf2   : > { %1227 = vst [vmem:[%s3686_s24 + $0x15] sm:$0x7] %v1226_v22  ;;  %v1494_v3 = vsub.s32 32, %v1493_v62  ;;  %v1495_v44 = vshll.u32 %v1486_v16, %v1493_v62  ;;  %v1498_v60 = vsub.s32 4294967266, %v1493_v62  ;;  %v1737_v16 = vsel %vm1731_vm4, %v1724_v51, 920167782 }
  0xf3   : > { %1382 = vst [vmem:[%s3686_s24 + $0x18] sm:$0x7] %v1381_v34  ;;  %v1740_v53 = vsel %vm1728_vm2, %v1718_v38, %v1721_v6  ;;  %v1741_v4 = vsel %vm1731_vm4, %v1727_v55, 1326507024  ;;  %v1738_v63 = vsel %vm1730_vm6, %v1721_v6, %v1737_v16  ;;  %v1732_v14 = vsel %vm1728_vm2, %v1712_v18, %v1715_v17 }
  0xf4   : > { %v1496_v7 = vshrl.u32 %v1478_v59, %v1494_v3  ;;  %v1499_v11 = vadd.s32 127, %v1498_v60  ;;  %v1742_v5 = vsel %vm1730_vm6, %v1724_v51, %v1741_v4  ;;  %v1734_v8 = vsel %vm1730_vm6, %v1718_v38, %v1733_v30 }
  0xf5   : > { %v1739_v59 = vsel %vm1729_vm5, %v1736_v52, %v1738_v63  ;;  %v1743_v15 = vsel %vm1729_vm5, %v1740_v53, %v1742_v5  ;;  %v2016_v23 = vor.u32 8388608, %v4259_v32  ;;  %v2020_v12 = vsel %vm2019_vm7, %v4261_v21, 0 }
  0xf6   : > { %v1497_v13 = vor.u32 %v1496_v7, %v1495_v44  ;;  %v1500_v58 = vshll.u32 %v1499_v11, 23  ;;  %v1747_v28 = vand.u32 65535, %v1743_v15  ;;  %v1748_v61 = vshrl.u32 %v1743_v15, 16 }
  0xf7   : > { %v1769_v45 = vand.u32 65535, %v1739_v59  ;;  %v1770_v20 = vshrl.u32 %v1739_v59, 16  ;;  %v4320_v35 = vand.u32 3, %v1528_v49  ;;  %v4322_v10 = vand.u32 3, %v1511_v36 }
  0xf8   : > { %v1501_v47 = vor.u32 4788187, %v1500_v58  ;;  %v1504_v40 = vcvt.s32.f32 %v1497_v13  ;;  %v4326_v17 = vsel %vm1729_vm5, %v1732_v14, %v1734_v8  ;;  %v1749_v2 = vmul.u32 %v1747_v28, %v4255_v56 }
  0xf9   : > { %v1750_v37 = vmul.u32 %v1748_v61, %v4255_v56  ;;  %v1751_v38 = vmul.u32 %v1747_v28, %v4268_v9  ;;  %v4331_v21 = vshrl.u32 %v2020_v12, 5  ;;  %v1771_v50 = vmul.u32 %v1769_v45, %v4255_v56 }
  0xfa   : > { %v1502_v46 = vand.u32 2147483647, %v1501_v47  ;;  %v1772_v26 = vmul.u32 %v1770_v20, %v4255_v56  ;;  %v1773_v36 = vmul.u32 %v1769_v45, %v4268_v9  ;;  %v1752_v51 = vmul.u32 %v1748_v61, %v4268_v9 }
  0xfb   : > { %v1753_v41 = vshll.u32 %v1750_v37, 16  ;;  %v1755_v22 = vshll.u32 %v1751_v38, 16  ;;  %v2022_v34 = vand.u32 31, %v2020_v12  ;;  %v1754_v55 = vshrl.u32 %v1750_v37, 16 }
  0xfc   : > { %v1505_v6 = vmul.f32 %v1504_v40, %v1502_v46  ;;  %v1774_v3 = vmul.u32 %v1770_v20, %v4268_v9  ;;  %v1775_v44 = vshll.u32 %v1772_v26, 16  ;;  %v1776_v18 = vshrl.u32 %v1772_v26, 16 }
  0xfd   : > { %vm1757_vm9 = vc.u32 %v1749_v2, %v1753_v41  ;;  %v1759_v60 = vadd.s32 %v1753_v41, %v1749_v2  ;;  %v1777_v7 = vshll.u32 %v1773_v36, 16  ;;  %v1756_v13 = vshrl.u32 %v1751_v38, 16 }
  0xfe   : > { %v1506_v62 = vxor.u32 2147483648, %v1505_v6  ;;  %v1758_v56 = vsel %vm1757_vm9, 1, %v3575_v43  ;;  %vm1779_vm10 = vc.u32 %v1771_v50, %v1775_v44  ;;  %v1781_v30 = vadd.s32 %v1775_v44, %v1771_v50 }
  0xff   : > { %v1760_v49 = vadd.s32 %v1758_v56, %v1752_v51  ;;  %vm1761_vm11 = vc.u32 %v1759_v60, %v1755_v22  ;;  %v1780_v9 = vsel %vm1779_vm10, 1, %v3575_v43  ;;  %v4351_v5 = vsub.s32 32, %v2022_v34 }
 0x100   : > { %v1507_v11 = vsel %vm1386_vm8, %v1506_v62, %v1505_v6  ;;  %v1762_v53 = vsel %vm1761_vm11, 1, %v3575_v43  ;;  %v1782_v4 = vadd.s32 %v1780_v9, %v1774_v3  ;;  %vm1783_vm8 = vc.u32 %v1781_v30, %v1777_v7 }
 0x101   : > { %v4344_v52 = vsel %vm4249_vm15, %v3977_v54, %v1507_v11  ;;  %v1764_v58 = vadd.s32 %v1762_v53, %v1760_v49  ;;  %v1784_v63 = vsel %vm1783_vm8, 1, %v3575_v43  ;;  %v1778_v8 = vshrl.u32 %v1773_v36, 16 }
 0x102   : > { %v1512_v16 = vmul.f32 %v4344_v52, %v4344_v52  ;;  %v1786_v59 = vadd.s32 %v1784_v63, %v1782_v4  ;;  %v4353_v47 = vadd.s32 %v1781_v30, %v1777_v7  ;;  %v2025_v40 = vshll.u32 %v3569_v25, %v2022_v34 }
 0x103   : > { %v1765_v15 = vadd.s32 %v1764_v58, %v1754_v55  ;;  %v2026_v12 = vshrl.u32 %v3570_v27, %v4351_v5  ;;  %v2028_v20 = vshll.u32 %v3570_v27, %v2022_v34  ;;  %v2029_v2 = vshrl.u32 %v3571_v29, %v4351_v5 }
 0x104   : > { %v1513_v19 = vmul.f32 -0.001358992, %v1512_v16  ;;  %v1520_v14 = vmul.f32 -0.00019511016, %v1512_v16  ;;  %v1787_v45 = vadd.s32 %v1786_v59, %v1776_v18  ;;  %v2031_v37 = vshll.u32 %v3571_v29, %v2022_v34 }
 0x105   : > { %v4359_v46 = vadd.s32 %v1765_v15, %v1756_v13  ;;  %v2032_v38 = vshrl.u32 %v3572_v31, %v4351_v5  ;;  %v1789_v36 = vmul.u32 %v4237_v57, %v4326_v17  ;;  %vm1531_vm12 = vcmp.eq.s32.totalorder %v4320_v35, 0 }
 0x106   : > { %v1514_v28 = vadd.f32 0.041655596, %v1513_v19  ;;  %v1521_v61 = vadd.f32 0.008332121, %v1520_v14  ;;  %v1788_v26 = vadd.s32 %v1787_v45, %v1778_v8  ;;  %v4371_v51 = vor.u32 %v2026_v12, %v2025_v40 }
 0x107   : > { %vm1791_vm13 = vc.u32 %v4359_v46, %v4353_v47  ;;  %v2034_v41 = vshll.u32 %v3572_v31, %v2022_v34  ;;  %vm2040_vm14 = vcmp.lt.s32.totalorder %v4331_v21, 1  ;;  %vm1530_vm15 = vcmp.lt.s32.totalorder %v4320_v35, 2 }
 0x108   : > { %v1515_v6 = vmul.f32 %v1514_v28, %v1512_v16  ;;  %v1522_v50 = vmul.f32 %v1521_v61, %v1512_v16  ;;  %v1792_v55 = vadd.s32 1, %v1788_v26  ;;  %v2035_v3 = vshrl.u32 %v3573_v33, %v4351_v5 }
 0x109   : > { %v4378_v57 = vor.u32 %v2029_v2, %v2028_v20  ;;  %v4380_v17 = vor.u32 %v2032_v38, %v2031_v37  ;;  %v2037_v44 = vshll.u32 %v3573_v33, %v2022_v34  ;;  %v2038_v60 = vshrl.u32 %v3574_v42, %v4351_v5 }
 0x10a   : > { %v1516_v22 = vadd.f32 -0.4999988, %v1515_v6  ;;  %v1523_v62 = vadd.f32 -0.16666654, %v1522_v50  ;;  %v1793_v11 = vsel %vm1791_vm13, %v1792_v55, %v1788_v26  ;;  %v2036_v56 = vor.u32 %v2035_v3, %v2034_v41 }
 0x10b   : > { %vm1534_vm0 = vcmp.eq.s32.totalorder %v4320_v35, 2  ;;  %v1794_v30 = vadd.s32 %v1793_v11, %v1789_v36  ;;  %v2039_v49 = vor.u32 %v2038_v60, %v2037_v44  ;;  %vm2043_vm1 = vcmp.lt.s32.totalorder %v4331_v21, 4 }
 0x10c   : > { %v1517_v18 = vmul.f32 %v1516_v22, %v1512_v16  ;;  %v1524_v7 = vmul.f32 %v1523_v62, %v1512_v16  ;;  %vm1686_vm2 = vcmp.eq.s32.totalorder %v4322_v10, 0  ;;  %vm2042_vm3 = vcmp.lt.s32.totalorder %v4331_v21, 3 }
 0x10d   : > { %vm1689_vm4 = vcmp.eq.s32.totalorder %v4322_v10, 2  ;;  %v1795_v34 = vadd.s32 536870912, %v1794_v30  ;;  %vm2041_vm5 = vcmp.lt.s32.totalorder %v4331_v21, 2  ;;  %v2048_v16 = vsel %vm2040_vm14, %v4371_v51, %v4378_v57 }
 0x10e   : > { %v1518_v9 = vadd.f32 1.0, %v1517_v18  ;;  %v1525_v53 = vadd.f32 1.0, %v1524_v7  ;;  %v2049_v58 = vsel %vm2043_vm1, %v2036_v56, 920167782  ;;  %v2052_v63 = vsel %vm2040_vm14, %v4378_v57, %v4380_v17 }
 0x10f   : > { %v4402_v19 = vshrl.u32 %v1795_v34, 30  ;;  %v2050_v14 = vsel %vm2042_vm3, %v4380_v17, %v2049_v58  ;;  %v2053_v8 = vsel %vm2043_vm1, %v2039_v49, 1326507024  ;;  %vm1685_vm6 = vcmp.lt.s32.totalorder %v4322_v10, 2 }
 0x110   : > { %v1526_v4 = vmul.f32 %v1525_v53, %v4344_v52  ;;  %v1535_v13 = vxor.u32 2147483648, %v1518_v9  ;;  %v4411_v52 = vshll.u32 %v2016_v23, 8  ;;  %vm1527_vm7 = vweird.f32 %v3977_v54 }
 0x111   : > { %v1797_v12 = vshll.u32 %v4402_v19, 30  ;;  %v2051_v28 = vsel %vm2041_vm5, %v2048_v16, %v2050_v14  ;;  %v2054_v32 = vsel %vm2042_vm3, %v2036_v56, %v2053_v8  ;;  %v2024_v60 = vshrl.u32 %v3569_v25, %v4351_v5 }
 0x112   : > { %v1532_v59 = vxor.u32 2147483648, %v1526_v4  ;;  %v1536_v15 = vsel %vm1534_vm0, %v1535_v13, %v1526_v4  ;;  %v1691_v40 = vsel %vm1689_vm4, %v1535_v13, %v1526_v4  ;;  %v2055_v45 = vsel %vm2041_vm5, %v2052_v63, %v2054_v32 }
 0x113   : > { %v2058_v54 = vshrl.u32 %v4411_v52, 16  ;;  %v1798_v37 = vsub.s32 %v1794_v30, %v1797_v12  ;;  %v2057_v38 = vand.u32 65535, %v4411_v52  ;;  %v2059_v26 = vand.u32 65535, %v2055_v45 }
 0x114   : > { %v1533_v23 = vsel %vm1531_vm12, %v1518_v9, %v1532_v59  ;;  %v1688_v61 = vsel %vm1686_vm2, %v1518_v9, %v1532_v59  ;;  %v2060_v10 = vshrl.u32 %v2055_v45, 16  ;;  %v2082_v22 = vshrl.u32 %v2051_v28, 16 }
 0x115   : > { %v1537_v20 = vsel %vm1530_vm15, %v1533_v23, %v1536_v15  ;;  %v1692_v2 = vsel %vm1685_vm6, %v1688_v61, %v1691_v40  ;;  %vm1799_vm9 = vcmp.lt.s32.totalorder %v1798_v37, 0  ;;  %v1800_v36 = vsub.s32 0, %v1798_v37 }
 0x116   : > { %v1538_v6 = vsel %vm1527_vm7, nan, %v1537_v20  ;;  %v1693_v50 = vsel %vm1527_vm7, nan, %v1692_v2  ;;  %v2063_v41 = vmul.u32 %v2059_v26, %v2058_v54  ;;  %v2061_v55 = vmul.u32 %v2059_v26, %v2057_v38 }
 0x117   : > { %1539 = vst [vmem:[%s3686_s24 + $0x1b] sm:$0x7] %v1538_v6  ;;  %v1801_v62 = vsel %vm1799_vm9, %v1800_v36, %v1798_v37  ;;  %v2062_v3 = vmul.u32 %v2060_v10, %v2057_v38  ;;  %v2081_v44 = vand.u32 65535, %v2051_v28  ;;  %v2064_v18 = vmul.u32 %v2060_v10, %v2058_v54 }
 0x118   : > { %1694 = vst [vmem:[%s3686_s24 + $0x1e] sm:$0x7] %v1693_v50  ;;  %v1802_v35 = vclz %v1801_v62  ;;  %v2084_v11 = vmul.u32 %v2082_v22, %v2057_v38  ;;  %v2067_v30 = vshll.u32 %v2063_v41, 16  ;;  %v1790_v49 = vadd.s32 %v4353_v47, %v4359_v46 }
 0x119   : > { %v2065_v7 = vshll.u32 %v2062_v3, 16  ;;  %v2085_v53 = vmul.u32 %v2081_v44, %v2058_v54  ;;  %vm1698_vm11 = vcmp.lt.s32.totalorder %v4215_v1, 0  ;;  %v2044_v34 = vsel %vm2040_vm14, %v2024_v60, %v4371_v51 }
 0x11a   : > { %v3382_v56 = vadd.s32 4294967294, %v1802_v35  ;;  %v2045_v5 = vsel %vm2043_vm1, %v4380_v17, 2102212464  ;;  %v2083_v58 = vmul.u32 %v2081_v44, %v2057_v38  ;;  %v2087_v47 = vshll.u32 %v2084_v11, 16 }
 0x11b   : > { %vm2069_vm10 = vc.u32 %v2061_v55, %v2065_v7  ;;  %v2071_v9 = vadd.s32 %v2065_v7, %v2061_v55  ;;  %v2046_v8 = vsel %vm2042_vm3, %v4378_v57, %v2045_v5  ;;  %v2086_v59 = vmul.u32 %v2082_v22, %v2058_v54 }
 0x11c   : > { %vm3383_vm8 = vcmp.lt.s32.totalorder %v3382_v56, 0  ;;  %v2070_v16 = vsel %vm2069_vm10, 1, %v3575_v43  ;;  %v2089_v51 = vshll.u32 %v2085_v53, 16  ;;  %v4450_v15 = vmul.f32 128.0, %v3684_v0 }
 0x11d   : > { %v1805_v4 = vsel %vm3383_vm8, 0, %v3382_v56  ;;  %v2072_v13 = vadd.s32 %v2070_v16, %v2064_v18  ;;  %vm2073_vm12 = vc.u32 %v2071_v9, %v2067_v30  ;;  %v1820_v12 = vsub.s32 4, %v4402_v19 }
 0x11e   : > { %v1806_v46 = vsub.s32 32, %v1805_v4  ;;  %v1807_v63 = vshll.u32 %v1798_v37, %v1805_v4  ;;  %v1810_v14 = vsub.s32 4294967266, %v1805_v4  ;;  %v2066_v28 = vshrl.u32 %v2062_v3, 16 }
 0x11f   : > { %v2068_v32 = vshrl.u32 %v2063_v41, 16  ;;  %v2074_v23 = vsel %vm2073_vm12, 1, %v3575_v43  ;;  %vm2091_vm13 = vc.u32 %v2083_v58, %v2087_v47  ;;  %v2093_v61 = vadd.s32 %v2087_v47, %v2083_v58 }
 0x120   : > { %v1808_v17 = vshrl.u32 %v1790_v49, %v1806_v46  ;;  %v1811_v40 = vadd.s32 127, %v1810_v14  ;;  %v2076_v2 = vadd.s32 %v2074_v23, %v2072_v13  ;;  %v2092_v57 = vsel %vm2091_vm13, 1, %v3575_v43 }
 0x121   : > { %v2088_v54 = vshrl.u32 %v2084_v11, 16  ;;  %v2094_v37 = vadd.s32 %v2092_v57, %v2086_v59  ;;  %vm2095_vm14 = vc.u32 %v2093_v61, %v2089_v51  ;;  %v2323_v38 = vand.u32 2139095040, %v4450_v15 }
 0x122   : > { %v1809_v45 = vor.u32 %v1808_v17, %v1807_v63  ;;  %v1812_v20 = vshll.u32 %v1811_v40, 23  ;;  %v2077_v26 = vadd.s32 %v2076_v2, %v2066_v28  ;;  %v2096_v36 = vsel %vm2095_vm14, 1, %v3575_v43 }
 0x123   : > { %v1821_v10 = vsel %vm1698_vm11, %v1820_v12, %v4402_v19  ;;  %v2090_v41 = vshrl.u32 %v2085_v53, 16  ;;  %v2098_v22 = vadd.s32 %v2096_v36, %v2094_v37  ;;  %v2324_v62 = vshrl.u32 %v2323_v38, 23 }
 0x124   : > { %v1813_v6 = vor.u32 4788187, %v1812_v20  ;;  %v1816_v50 = vcvt.s32.f32 %v1809_v45  ;;  %v2078_v3 = vadd.s32 %v2077_v26, %v2068_v32  ;;  %v2097_v44 = vadd.s32 %v2093_v61, %v2089_v51 }
 0x125   : > { %vm4462_vm15 = vcmp.le.f32.partialorder %v1696_v24, 0.7853982  ;;  %v2047_v60 = vsel %vm2041_vm5, %v2044_v34, %v2046_v8  ;;  %v2099_v18 = vadd.s32 %v2098_v22, %v2088_v54  ;;  %v3393_v7 = vadd.s32 4294967169, %v2324_v62 }
 0x126   : > { %v1814_v55 = vand.u32 2147483647, %v1813_v6  ;;  %v1823_v19 = vsel %vm4462_vm15, 0, %v1821_v10  ;;  %v2320_v56 = vand.u32 2147483647, %v4450_v15  ;;  %v2101_v53 = vmul.u32 %v4411_v52, %v2047_v60 }
 0x127   : > { %v2100_v30 = vadd.s32 %v2099_v18, %v2090_v41  ;;  %v2330_v49 = vadd.s32 1, %v3393_v7  ;;  %vm2103_vm0 = vc.u32 %v2078_v3, %v2097_v44  ;;  %v1840_v24 = vadd.s32 3, %v1823_v19 }
 0x128   : > { %v1817_v11 = vmul.f32 %v1816_v50, %v1814_v55  ;;  %v2327_v34 = vand.u32 8388607, %v2320_v56  ;;  %v4482_v52 = vmul.f32 256.0, %v3684_v0  ;;  %v4488_v14 = vand.u32 3, %v1823_v19 }
 0x129   : > { %v2104_v5 = vadd.s32 1, %v2100_v30  ;;  %vm2331_vm1 = vcmp.gt.s32.totalorder %v2330_v49, 0  ;;  %v4486_v63 = vand.u32 3, %v1840_v24  ;;  %v4493_v28 = vadd.s32 %v2097_v44, %v2078_v3 }
 0x12a   : > { %v1818_v9 = vxor.u32 2147483648, %v1817_v11  ;;  %v2332_v16 = vsel %vm2331_vm1, %v2330_v49, 0  ;;  %v2632_v59 = vand.u32 2147483647, %v4482_v52  ;;  %v2328_v12 = vor.u32 8388608, %v2327_v34 }
 0x12b   : > { %v2105_v13 = vsel %vm2103_vm0, %v2104_v5, %v2100_v30  ;;  %v2334_v58 = vand.u32 31, %v2332_v16  ;;  %v4495_v32 = vshrl.u32 %v2332_v16, 5  ;;  %vm1846_vm2 = vcmp.eq.s32.totalorder %v4486_v63, 2 }
 0x12c   : > { %v1819_v21 = vsel %vm1698_vm11, %v1818_v9, %v1817_v11  ;;  %v2106_v46 = vadd.s32 %v2105_v13, %v2101_v53  ;;  %vm2001_vm3 = vcmp.eq.s32.totalorder %v4488_v14, 2  ;;  %v2635_v10 = vand.u32 2139095040, %v4482_v52 }
 0x12d   : > { %v4479_v4 = vsel %vm4462_vm15, %v4215_v1, %v1819_v21  ;;  %v4490_v8 = vsub.s32 32, %v2334_v58  ;;  %v2340_v23 = vshll.u32 %v3570_v27, %v2334_v58  ;;  %v2343_v61 = vshll.u32 %v3571_v29, %v2334_v58 }
 0x12e   : > { %v1824_v47 = vmul.f32 %v4479_v4, %v4479_v4  ;;  %v2107_v40 = vadd.s32 536870912, %v2106_v46  ;;  %v2346_v37 = vshll.u32 %v3572_v31, %v2334_v58  ;;  %v2349_v6 = vshll.u32 %v3573_v33, %v2334_v58 }
 0x12f   : > { %v2341_v57 = vshrl.u32 %v3571_v29, %v4490_v8  ;;  %v2344_v54 = vshrl.u32 %v3572_v31, %v4490_v8  ;;  %v2347_v38 = vshrl.u32 %v3573_v33, %v4490_v8  ;;  %vm1843_vm4 = vcmp.eq.s32.totalorder %v4486_v63, 0 }
 0x130   : > { %v1825_v51 = vmul.f32 -0.001358992, %v1824_v47  ;;  %v1832_v17 = vmul.f32 -0.00019511016, %v1824_v47  ;;  %v4499_v2 = vshrl.u32 %v2107_v40, 30  ;;  %vm1998_vm5 = vcmp.eq.s32.totalorder %v4488_v14, 0 }
 0x131   : > { %v2337_v41 = vshll.u32 %v3569_v25, %v2334_v58  ;;  %v2338_v22 = vshrl.u32 %v3570_v27, %v4490_v8  ;;  %v2350_v62 = vshrl.u32 %v3574_v42, %v4490_v8  ;;  %v4520_v55 = vshll.u32 %v2328_v12, 8 }
 0x132   : > { %v1826_v45 = vadd.f32 0.041655596, %v1825_v51  ;;  %v1833_v20 = vadd.f32 0.008332121, %v1832_v17  ;;  %v2109_v36 = vshll.u32 %v4499_v2, 30  ;;  %vm1842_vm6 = vcmp.lt.s32.totalorder %v4486_v63, 2 }
 0x133   : > { %vm1997_vm7 = vcmp.lt.s32.totalorder %v4488_v14, 2  ;;  %v4524_v60 = vor.u32 %v2341_v57, %v2340_v23  ;;  %vm1839_vm9 = vweird.f32 %v4215_v1  ;;  %v4527_v18 = vor.u32 %v2344_v54, %v2343_v61 }
 0x134   : > { %v1827_v50 = vmul.f32 %v1826_v45, %v1824_v47  ;;  %v1834_v26 = vmul.f32 %v1833_v20, %v1824_v47  ;;  %v2110_v35 = vsub.s32 %v2106_v46, %v2109_v36  ;;  %v2348_v7 = vor.u32 %v2347_v38, %v2346_v37 }
 0x135   : > { %v2351_v11 = vor.u32 %v2350_v62, %v2349_v6  ;;  %vm2352_vm10 = vcmp.lt.s32.totalorder %v4495_v32, 1  ;;  %vm2355_vm8 = vcmp.lt.s32.totalorder %v4495_v32, 4  ;;  %v4532_v9 = vand.u32 65535, %v4520_v55 }
 0x136   : > { %v1828_v3 = vadd.f32 -0.4999988, %v1827_v50  ;;  %v1835_v44 = vadd.f32 -0.16666654, %v1834_v26  ;;  %vm2111_vm11 = vcmp.lt.s32.totalorder %v2110_v35, 0  ;;  %v2112_v49 = vsub.s32 0, %v2110_v35 }
 0x137   : > { %v4535_v53 = vshrl.u32 %v4520_v55, 16  ;;  %v2636_v24 = vshrl.u32 %v2635_v10, 23  ;;  %vm2010_vm12 = vcmp.lt.s32.totalorder %v4218_v48, 0  ;;  %vm2354_vm13 = vcmp.lt.s32.totalorder %v4495_v32, 3 }
 0x138   : > { %v1829_v19 = vmul.f32 %v1828_v3, %v1824_v47  ;;  %v1836_v30 = vmul.f32 %v1835_v44, %v1824_v47  ;;  %v2113_v34 = vsel %vm2111_vm11, %v2112_v49, %v2110_v35  ;;  %v2339_v13 = vor.u32 %v2338_v22, %v2337_v41 }
 0x139   : > { %v2114_v16 = vclz %v2113_v34  ;;  %vm2353_vm14 = vcmp.lt.s32.totalorder %v4495_v32, 2  ;;  %v2364_v58 = vsel %vm2352_vm10, %v4524_v60, %v4527_v18  ;;  %v2361_v51 = vsel %vm2355_vm8, %v2348_v7, 920167782 }
 0x13a   : > { %v1830_v5 = vadd.f32 1.0, %v1829_v19  ;;  %v1837_v21 = vadd.f32 1.0, %v1836_v30  ;;  %v2365_v17 = vsel %vm2355_vm8, %v2351_v11, 1326507024  ;;  %v2132_v12 = vsub.s32 4, %v4499_v2 }
 0x13b   : > { %v3388_v40 = vadd.s32 4294967294, %v2114_v16  ;;  %v2366_v23 = vsel %vm2354_vm13, %v2348_v7, %v2365_v17  ;;  %v3399_v61 = vadd.s32 4294967169, %v2636_v24  ;;  %v2360_v54 = vsel %vm2352_vm10, %v2339_v13, %v4524_v60 }
 0x13c   : > { %v1838_v47 = vmul.f32 %v1837_v21, %v4479_v4  ;;  %v1847_v46 = vxor.u32 2147483648, %v1830_v5  ;;  %v2367_v57 = vsel %vm2353_vm14, %v2364_v58, %v2366_v23  ;;  %v2362_v37 = vsel %vm2354_vm13, %v4527_v18, %v2361_v51 }
 0x13d   : > { %vm3389_vm15 = vcmp.lt.s32.totalorder %v3388_v40, 0  ;;  %v2372_v38 = vshrl.u32 %v2367_v57, 16  ;;  %v2371_v36 = vand.u32 65535, %v2367_v57  ;;  %v2363_v11 = vsel %vm2353_vm14, %v2360_v54, %v2362_v37 }
 0x13e   : > { %v1844_v45 = vxor.u32 2147483648, %v1838_v47  ;;  %v1848_v20 = vsel %vm1846_vm2, %v1847_v46, %v1838_v47  ;;  %v2003_v4 = vsel %vm2001_vm3, %v1847_v46, %v1838_v47  ;;  %v2117_v26 = vsel %vm3389_vm15, 0, %v3388_v40 }
 0x13f   : > { %v2118_v22 = vsub.s32 32, %v2117_v26  ;;  %v2119_v62 = vshll.u32 %v2110_v35, %v2117_v26  ;;  %v2122_v7 = vsub.s32 4294967266, %v2117_v26  ;;  %v2133_v63 = vsel %vm2010_vm12, %v2132_v12, %v4499_v2 }
 0x140   : > { %v1845_v6 = vsel %vm1843_vm4, %v1830_v5, %v1844_v45  ;;  %v2000_v50 = vsel %vm1998_vm5, %v1830_v5, %v1844_v45  ;;  %v2336_v14 = vshrl.u32 %v3569_v25, %v4490_v8  ;;  %v2374_v35 = vmul.u32 %v2372_v38, %v4532_v9 }
 0x141   : > { %v1849_v10 = vsel %vm1842_vm6, %v1845_v6, %v1848_v20  ;;  %v2004_v41 = vsel %vm1997_vm7, %v2000_v50, %v2003_v4  ;;  %v2120_v19 = vshrl.u32 %v4493_v28, %v2118_v22  ;;  %vm4589_vm0 = vcmp.le.f32.partialorder %v2008_v39, 0.7853982 }
 0x142   : > { %v1850_v3 = vsel %vm1839_vm9, nan, %v1849_v10  ;;  %v2005_v44 = vsel %vm1839_vm9, nan, %v2004_v41  ;;  %v2123_v30 = vadd.s32 127, %v2122_v7  ;;  %v2393_v49 = vand.u32 65535, %v2363_v11 }
 0x143   : > { %1851 = vst [vmem:[%s3686_s24 + $0x21] sm:$0x7] %v1850_v3  ;;  %v2121_v24 = vor.u32 %v2120_v19, %v2119_v62  ;;  %v2373_v28 = vmul.u32 %v2371_v36, %v4532_v9  ;;  %v2394_v5 = vshrl.u32 %v2363_v11, 16  ;;  %v4596_v2 = vand.u32 8388607, %v2632_v59 }
 0x144   : > { %2006 = vst [vmem:[%s3686_s24 + $0x24] sm:$0x7] %v2005_v44  ;;  %v2124_v8 = vshll.u32 %v2123_v30, 23  ;;  %v4600_v21 = vsel %vm4589_vm0, 0, %v2133_v63  ;;  %v2375_v39 = vmul.u32 %v2371_v36, %v4535_v53  ;;  %v2642_v34 = vadd.s32 1, %v3399_v61 }
 0x145   : > { %v2356_v16 = vsel %vm2352_vm10, %v2336_v14, %v2339_v13  ;;  %v2357_v58 = vsel %vm2355_vm8, %v4527_v18, 2102212464  ;;  %v2376_v47 = vmul.u32 %v2372_v38, %v4535_v53  ;;  %v2377_v46 = vshll.u32 %v2374_v35, 16 }
 0x146   : > { %v2125_v51 = vor.u32 4788187, %v2124_v8  ;;  %v2128_v17 = vcvt.s32.f32 %v2121_v24  ;;  %v2379_v40 = vshll.u32 %v2375_v39, 16  ;;  %v2395_v12 = vmul.u32 %v2393_v49, %v4532_v9 }
 0x147   : > { %vm2381_vm1 = vc.u32 %v2373_v28, %v2377_v46  ;;  %v2383_v23 = vadd.s32 %v2377_v46, %v2373_v28  ;;  %v2396_v45 = vmul.u32 %v2394_v5, %v4532_v9  ;;  %v2397_v61 = vmul.u32 %v2393_v49, %v4535_v53 }
 0x148   : > { %v2126_v20 = vand.u32 2147483647, %v2125_v51  ;;  %v2358_v13 = vsel %vm2354_vm13, %v4524_v60, %v2357_v58  ;;  %v2378_v18 = vshrl.u32 %v2374_v35, 16  ;;  %v2382_v4 = vsel %vm2381_vm1, 1, %v3575_v43 }
 0x149   : > { %v2384_v57 = vadd.s32 %v2382_v4, %v2376_v47  ;;  %vm2385_vm2 = vc.u32 %v2383_v23, %v2379_v40  ;;  %v2398_v54 = vmul.u32 %v2394_v5, %v4535_v53  ;;  %v2399_v37 = vshll.u32 %v2396_v45, 16 }
 0x14a   : > { %v2129_v38 = vmul.f32 %v2128_v17, %v2126_v20  ;;  %v2152_v6 = vadd.s32 3, %v4600_v21  ;;  %v2386_v9 = vsel %vm2385_vm2, 1, %v3575_v43  ;;  %v2401_v50 = vshll.u32 %v2397_v61, 16 }
 0x14b   : > { %v2388_v26 = vadd.s32 %v2386_v9, %v2384_v57  ;;  %vm2403_vm3 = vc.u32 %v2395_v12, %v2399_v37  ;;  %v2405_v36 = vadd.s32 %v2399_v37, %v2395_v12  ;;  %vm2643_vm4 = vcmp.gt.s32.totalorder %v2642_v34, 0 }
 0x14c   : > { %v2130_v10 = vxor.u32 2147483648, %v2129_v38  ;;  %v2380_v60 = vshrl.u32 %v2375_v39, 16  ;;  %v2404_v41 = vsel %vm2403_vm3, 1, %v3575_v43  ;;  %v2644_v22 = vsel %vm2643_vm4, %v2642_v34, 0 }
 0x14d   : > { %v2389_v62 = vadd.s32 %v2388_v26, %v2378_v18  ;;  %v2400_v3 = vshrl.u32 %v2396_v45, 16  ;;  %v2406_v44 = vadd.s32 %v2404_v41, %v2398_v54  ;;  %vm2407_vm5 = vc.u32 %v2405_v36, %v2401_v50 }
 0x14e   : > { %v2131_v53 = vsel %vm2010_vm12, %v2130_v10, %v2129_v38  ;;  %v2359_v7 = vsel %vm2353_vm14, %v2356_v16, %v2358_v13  ;;  %v2408_v11 = vsel %vm2407_vm5, 1, %v3575_v43  ;;  %v2646_v19 = vand.u32 31, %v2644_v22 }
 0x14f   : > { %v4628_v63 = vsel %vm4589_vm0, %v4218_v48, %v2131_v53  ;;  %v2402_v14 = vshrl.u32 %v2397_v61, 16  ;;  %v2410_v35 = vadd.s32 %v2408_v11, %v2406_v44  ;;  %v2640_v30 = vor.u32 8388608, %v4596_v2 }
 0x150   : > { %v2136_v49 = vmul.f32 %v4628_v63, %v4628_v63  ;;  %v4633_v24 = vadd.s32 %v2389_v62, %v2380_v60  ;;  %v4635_v28 = vadd.s32 %v2405_v36, %v2401_v50  ;;  %v4637_v32 = vsub.s32 32, %v2646_v19 }
 0x151   : > { %v4639_v5 = vand.u32 3, %v2152_v6  ;;  %v2411_v8 = vadd.s32 %v2410_v35, %v2400_v3  ;;  %v2413_v1 = vmul.u32 %v4520_v55, %v2359_v7  ;;  %v4642_v39 = vshrl.u32 %v2644_v22, 5 }
 0x152   : > { %v2137_v34 = vmul.f32 -0.001358992, %v2136_v49  ;;  %v2144_v16 = vmul.f32 -0.00019511016, %v2136_v49  ;;  %v2652_v2 = vshll.u32 %v3570_v27, %v2646_v19  ;;  %v2655_v58 = vshll.u32 %v3571_v29, %v2646_v19 }
 0x153   : > { %v2412_v47 = vadd.s32 %v2411_v8, %v2402_v14  ;;  %v2653_v46 = vshrl.u32 %v3571_v29, %v4637_v32  ;;  %v2656_v51 = vshrl.u32 %v3572_v31, %v4637_v32  ;;  %v2658_v17 = vshll.u32 %v3572_v31, %v2646_v19 }
 0x154   : > { %v2138_v40 = vadd.f32 0.041655596, %v2137_v34  ;;  %v2145_v12 = vadd.f32 0.008332121, %v2144_v16  ;;  %vm2415_vm6 = vc.u32 %v4633_v24, %v4635_v28  ;;  %v2659_v55 = vshrl.u32 %v3573_v33, %v4637_v32 }
 0x155   : > { %v2416_v23 = vadd.s32 1, %v2412_v47  ;;  %v2649_v45 = vshll.u32 %v3569_v25, %v2646_v19  ;;  %v2650_v61 = vshrl.u32 %v3570_v27, %v4637_v32  ;;  %v2661_v20 = vshll.u32 %v3573_v33, %v2646_v19 }
 0x156   : > { %v2139_v13 = vmul.f32 %v2138_v40, %v2136_v49  ;;  %v2146_v18 = vmul.f32 %v2145_v12, %v2136_v49  ;;  %v2308_v4 = vand.u32 3, %v4600_v21  ;;  %v2662_v57 = vshrl.u32 %v3574_v42, %v4637_v32 }
 0x157   : > { %v2417_v54 = vsel %vm2415_vm6, %v2416_v23, %v2412_v47  ;;  %v4662_v37 = vor.u32 %v2653_v46, %v2652_v2  ;;  %v4664_v38 = vor.u32 %v2656_v51, %v2655_v58  ;;  %v2660_v6 = vor.u32 %v2659_v55, %v2658_v17 }
 0x158   : > { %v2140_v9 = vadd.f32 -0.4999988, %v2139_v13  ;;  %v2147_v50 = vadd.f32 -0.16666654, %v2146_v18  ;;  %vm2154_vm7 = vcmp.lt.s32.totalorder %v4639_v5, 2  ;;  %v2418_v26 = vadd.s32 %v2417_v54, %v2413_v1 }
 0x159   : > { %v2663_v36 = vor.u32 %v2662_v57, %v2661_v20  ;;  %vm2151_vm9 = vweird.f32 %v4218_v48  ;;  %vm2155_vm10 = vcmp.eq.s32.totalorder %v4639_v5, 0  ;;  %v4669_v21 = vor.u32 %v2650_v61, %v2649_v45 }
 0x15a   : > { %vm2664_vm11 = vcmp.lt.s32.totalorder %v4642_v39, 1  ;;  %vm2667_vm8 = vcmp.lt.s32.totalorder %v4642_v39, 4  ;;  %v2141_v10 = vmul.f32 %v2140_v9, %v2136_v49  ;;  %v2148_v60 = vmul.f32 %v2147_v50, %v2136_v49 }
 0x15b   : > { %v2419_v41 = vadd.s32 536870912, %v2418_v26  ;;  %vm2666_vm12 = vcmp.lt.s32.totalorder %v4642_v39, 3  ;;  %vm2665_vm13 = vcmp.lt.s32.totalorder %v4642_v39, 2  ;;  %v2673_v22 = vsel %vm2667_vm8, %v2660_v6, 920167782 }
 0x15c   : > { %v2677_v62 = vsel %vm2667_vm8, %v2663_v36, 1326507024  ;;  %v4679_v3 = vshll.u32 %v2640_v30, 8  ;;  %v2142_v44 = vadd.f32 1.0, %v2141_v10  ;;  %v2149_v53 = vadd.f32 1.0, %v2148_v60 }
 0x15d   : > { %v4681_v7 = vshrl.u32 %v2419_v41, 30  ;;  %v2676_v11 = vsel %vm2664_vm11, %v4662_v37, %v4664_v38  ;;  %vm2158_vm14 = vcmp.eq.s32.totalorder %v4639_v5, 2  ;;  %vm2313_vm15 = vcmp.eq.s32.totalorder %v2308_v4, 2 }
 0x15e   : > { %v2672_v19 = vsel %vm2664_vm11, %v4669_v21, %v4662_v37  ;;  %v2678_v14 = vsel %vm2666_vm12, %v2660_v6, %v2677_v62  ;;  %v2150_v35 = vmul.f32 %v2149_v53, %v4628_v63  ;;  %v2159_v30 = vxor.u32 2147483648, %v2142_v44 }
 0x15f   : > { %v2421_v49 = vshll.u32 %v4681_v7, 30  ;;  %v2674_v8 = vsel %vm2666_vm12, %v4664_v38, %v2673_v22  ;;  %vm2309_vm0 = vcmp.lt.s32.totalorder %v2308_v4, 2  ;;  %vm2310_vm1 = vcmp.eq.s32.totalorder %v2308_v4, 0 }
 0x160   : > { %v2679_v1 = vsel %vm2665_vm13, %v2676_v11, %v2678_v14  ;;  %v2681_v34 = vand.u32 65535, %v4679_v3  ;;  %v2156_v16 = vxor.u32 2147483648, %v2150_v35  ;;  %v2160_v2 = vsel %vm2158_vm14, %v2159_v30, %v2150_v35 }
 0x161   : > { %v2315_v58 = vsel %vm2313_vm15, %v2159_v30, %v2150_v35  ;;  %v2422_v47 = vsub.s32 %v2418_v26, %v2421_v49  ;;  %v2675_v63 = vsel %vm2665_vm13, %v2672_v19, %v2674_v8  ;;  %v2682_v46 = vshrl.u32 %v4679_v3, 16 }
 0x162   : > { %v2683_v51 = vand.u32 65535, %v2679_v1  ;;  %v2684_v17 = vshrl.u32 %v2679_v1, 16  ;;  %v2157_v40 = vsel %vm2155_vm10, %v2142_v44, %v2156_v16  ;;  %v2312_v12 = vsel %vm2310_vm1, %v2142_v44, %v2156_v16 }
 0x163   : > { %vm2423_vm2 = vcmp.lt.s32.totalorder %v2422_v47, 0  ;;  %v2424_v55 = vsub.s32 0, %v2422_v47  ;;  %v2161_v23 = vsel %vm2154_vm7, %v2157_v40, %v2160_v2  ;;  %v2316_v45 = vsel %vm2309_vm0, %v2312_v12, %v2315_v58 }
 0x164   : > { %v2685_v61 = vmul.u32 %v2683_v51, %v2681_v34  ;;  %v2162_v20 = vsel %vm2151_vm9, nan, %v2161_v23  ;;  %v2317_v13 = vsel %vm2151_vm9, nan, %v2316_v45  ;;  %v2686_v57 = vmul.u32 %v2684_v17, %v2681_v34 }
 0x165   : > { %v2425_v18 = vsel %vm2423_vm2, %v2424_v55, %v2422_v47  ;;  %2163 = vst [vmem:[%s3686_s24 + $0x27] sm:$0x7] %v2162_v20  ;;  %v2687_v6 = vmul.u32 %v2683_v51, %v2682_v46  ;;  %v2705_v9 = vand.u32 65535, %v2675_v63  ;;  %v2706_v50 = vshrl.u32 %v2675_v63, 16 }
 0x166   : > { %v2426_v54 = vclz %v2425_v18  ;;  %2318 = vst [vmem:[%s3686_s24 + $0x2a] sm:$0x7] %v2317_v13  ;;  %v2688_v26 = vmul.u32 %v2684_v17, %v2682_v46  ;;  %v2689_v5 = vshll.u32 %v2686_v57, 16  ;;  %v2414_v41 = vadd.s32 %v4635_v28, %v4633_v24 }
 0x167   : > { %v2691_v4 = vshll.u32 %v2687_v6, 16  ;;  %v2708_v10 = vmul.u32 %v2706_v50, %v2681_v34  ;;  %v2707_v22 = vmul.u32 %v2705_v9, %v2681_v34  ;;  %v2709_v53 = vmul.u32 %v2705_v9, %v2682_v46 }
 0x168   : > { %v3394_v36 = vadd.s32 4294967294, %v2426_v54  ;;  %vm2693_vm3 = vc.u32 %v2685_v61, %v2689_v5  ;;  %v2695_v60 = vadd.s32 %v2689_v5, %v2685_v61  ;;  %vm2322_vm6 = vcmp.lt.s32.totalorder %v4450_v15, 0 }
 0x169   : > { %v2694_v48 = vsel %vm2693_vm3, 1, %v3575_v43  ;;  %v2711_v11 = vshll.u32 %v2708_v10, 16  ;;  %v2648_v30 = vshrl.u32 %v3569_v25, %v4637_v32  ;;  %v4723_v49 = vmul.f32 512.0, %v3684_v0 }
 0x16a   : > { %vm3395_vm4 = vcmp.lt.s32.totalorder %v3394_v36, 0  ;;  %v2696_v44 = vadd.s32 %v2694_v48, %v2688_v26  ;;  %vm2697_vm5 = vc.u32 %v2695_v60, %v2691_v4  ;;  %v2690_v8 = vshrl.u32 %v2686_v57, 16 }
 0x16b   : > { %v2429_v62 = vsel %vm3395_vm4, 0, %v3394_v36  ;;  %v2710_v1 = vmul.u32 %v2706_v50, %v2682_v46  ;;  %v2444_v34 = vsub.s32 4, %v4681_v7  ;;  %v2669_v16 = vsel %vm2667_vm8, %v4664_v38, 2102212464 }
 0x16c   : > { %v2430_v19 = vsub.s32 32, %v2429_v62  ;;  %v2431_v14 = vshll.u32 %v2422_v47, %v2429_v62  ;;  %v2434_v35 = vsub.s32 4294967266, %v2429_v62  ;;  %v2698_v2 = vsel %vm2697_vm5, 1, %v3575_v43 }
 0x16d   : > { %v2713_v58 = vshll.u32 %v2709_v53, 16  ;;  %v2700_v51 = vadd.s32 %v2698_v2, %v2696_v44  ;;  %vm2715_vm7 = vc.u32 %v2707_v22, %v2711_v11  ;;  %v2692_v32 = vshrl.u32 %v2687_v6, 16 }
 0x16e   : > { %v2432_v24 = vshrl.u32 %v2414_v41, %v2430_v19  ;;  %v2435_v28 = vadd.s32 127, %v2434_v35  ;;  %v2716_v0 = vsel %vm2715_vm7, 1, %v3575_v43  ;;  %v2717_v17 = vadd.s32 %v2711_v11, %v2707_v22 }
 0x16f   : > { %v2947_v40 = vand.u32 2139095040, %v4723_v49  ;;  %v2701_v55 = vadd.s32 %v2700_v51, %v2690_v8  ;;  %v2718_v23 = vadd.s32 %v2716_v0, %v2710_v1  ;;  %v2445_v38 = vsel %vm2322_vm6, %v2444_v34, %v4681_v7 }
 0x170   : > { %v2433_v47 = vor.u32 %v2432_v24, %v2431_v14  ;;  %v2436_v63 = vshll.u32 %v2435_v28, 23  ;;  %v2712_v45 = vshrl.u32 %v2708_v10, 16  ;;  %vm2719_vm9 = vc.u32 %v2717_v17, %v2713_v58 }
 0x171   : > { %v2948_v61 = vshrl.u32 %v2947_v40, 23  ;;  %v2668_v13 = vsel %vm2664_vm11, %v2648_v30, %v4669_v21  ;;  %v2670_v18 = vsel %vm2666_vm12, %v4662_v37, %v2669_v16  ;;  %v2720_v57 = vsel %vm2719_vm9, 1, %v3575_v43 }
 0x172   : > { %v2437_v46 = vor.u32 4788187, %v2436_v63  ;;  %v2440_v12 = vcvt.s32.f32 %v2433_v47  ;;  %vm4744_vm10 = vcmp.le.f32.partialorder %v2320_v56, 0.7853982  ;;  %v2714_v7 = vshrl.u32 %v2709_v53, 16 }
 0x173   : > { %v2722_v6 = vadd.s32 %v2720_v57, %v2718_v23  ;;  %v3405_v9 = vadd.s32 4294967169, %v2948_v61  ;;  %v2447_v26 = vsel %vm4744_vm10, 0, %v2445_v38  ;;  %v4750_v21 = vadd.s32 %v2701_v55, %v2692_v32 }
 0x174   : > { %v2438_v20 = vand.u32 2147483647, %v2437_v46  ;;  %v4752_v5 = vadd.s32 %v2717_v17, %v2713_v58  ;;  %v2671_v37 = vsel %vm2665_vm13, %v2668_v13, %v2670_v18  ;;  %v2464_v10 = vadd.s32 3, %v2447_v26 }
 0x175   : > { %v2723_v36 = vadd.s32 %v2722_v6, %v2712_v45  ;;  %v2954_v4 = vadd.s32 1, %v3405_v9  ;;  %v2725_v48 = vmul.u32 %v4679_v3, %v2671_v37  ;;  %v2944_v44 = vand.u32 2147483647, %v4723_v49 }
 0x176   : > { %v2441_v50 = vmul.f32 %v2440_v12, %v2438_v20  ;;  %vm2727_vm8 = vc.u32 %v4750_v21, %v4752_v5  ;;  %v4765_v19 = vand.u32 3, %v2464_v10  ;;  %v4769_v28 = vand.u32 3, %v2447_v26 }
 0x177   : > { %v2724_v60 = vadd.s32 %v2723_v36, %v2714_v7  ;;  %vm2955_vm11 = vcmp.gt.s32.totalorder %v2954_v4, 0  ;;  %v2951_v8 = vand.u32 8388607, %v2944_v44  ;;  %vm2463_vm1 = vweird.f32 %v4450_v15 }
 0x178   : > { %v2442_v56 = vxor.u32 2147483648, %v2441_v50  ;;  %v2956_v22 = vsel %vm2955_vm11, %v2954_v4, 0  ;;  %vm2470_vm12 = vcmp.eq.s32.totalorder %v4765_v19, 2  ;;  %vm2467_vm13 = vcmp.eq.s32.totalorder %v4765_v19, 0 }
 0x179   : > { %v2728_v62 = vadd.s32 1, %v2724_v60  ;;  %v2958_v53 = vand.u32 31, %v2956_v22  ;;  %v4774_v2 = vshrl.u32 %v2956_v22, 5  ;;  %vm2622_vm14 = vcmp.eq.s32.totalorder %v4769_v28, 0 }
 0x17a   : > { %v2443_v41 = vsel %vm2322_vm6, %v2442_v56, %v2441_v50  ;;  %vm2466_vm15 = vcmp.lt.s32.totalorder %v4765_v19, 2  ;;  %vm2621_vm0 = vcmp.lt.s32.totalorder %v4769_v28, 2  ;;  %v2952_v45 = vor.u32 8388608, %v2951_v8 }
 0x17b   : > { %v2446_v39 = vsel %vm4744_vm10, %v4450_v15, %v2443_v41  ;;  %v2729_v14 = vsel %vm2727_vm8, %v2728_v62, %v2724_v60  ;;  %v4767_v35 = vsub.s32 32, %v2958_v53  ;;  %v2964_v58 = vshll.u32 %v3570_v27, %v2958_v53 }
 0x17c   : > { %v2448_v11 = vmul.f32 %v2446_v39, %v2446_v39  ;;  %v2730_v24 = vadd.s32 %v2729_v14, %v2725_v48  ;;  %v2967_v63 = vshll.u32 %v3571_v29, %v2958_v53  ;;  %v2973_v17 = vshll.u32 %v3573_v33, %v2958_v53 }
 0x17d   : > { %v2965_v47 = vshrl.u32 %v3571_v29, %v4767_v35  ;;  %v2968_v40 = vshrl.u32 %v3572_v31, %v4767_v35  ;;  %v2970_v46 = vshll.u32 %v3572_v31, %v2958_v53  ;;  %v2971_v12 = vshrl.u32 %v3573_v33, %v4767_v35 }
 0x17e   : > { %v2449_v30 = vmul.f32 -0.001358992, %v2448_v11  ;;  %v2456_v3 = vmul.f32 -0.00019511016, %v2448_v11  ;;  %v2731_v16 = vadd.s32 536870912, %v2730_v24  ;;  %v2974_v29 = vshrl.u32 %v3574_v42, %v4767_v35 }
 0x17f   : > { %v2961_v61 = vshll.u32 %v3569_v25, %v2958_v53  ;;  %v2962_v31 = vshrl.u32 %v3570_v27, %v4767_v35  ;;  %vm2979_vm2 = vcmp.lt.s32.totalorder %v4774_v2, 4  ;;  %v4800_v18 = vor.u32 %v2965_v47, %v2964_v58 }
 0x180   : > { %v2450_v1 = vadd.f32 0.041655596, %v2449_v30  ;;  %v2457_v34 = vadd.f32 0.008332121, %v2456_v3  ;;  %v4780_v0 = vshrl.u32 %v2731_v16, 30  ;;  %v2975_v33 = vor.u32 %v2974_v29, %v2973_v17 }
 0x181   : > { %v4802_v57 = vor.u32 %v2968_v40, %v2967_v63  ;;  %v2972_v54 = vor.u32 %v2971_v12, %v2970_v46  ;;  %vm2976_vm3 = vcmp.lt.s32.totalorder %v4774_v2, 1  ;;  %vm2625_vm5 = vcmp.eq.s32.totalorder %v4769_v28, 2 }
 0x182   : > { %v2451_v51 = vmul.f32 %v2450_v1, %v2448_v11  ;;  %v2458_v32 = vmul.f32 %v2457_v34, %v2448_v11  ;;  %v2733_v38 = vshll.u32 %v4780_v0, 30  ;;  %vm2978_vm6 = vcmp.lt.s32.totalorder %v4774_v2, 3 }
 0x183   : > { %v2989_v27 = vsel %vm2979_vm2, %v2975_v33, 1326507024  ;;  %v4809_v50 = vshll.u32 %v2952_v45, 8  ;;  %v4811_v4 = vor.u32 %v2962_v31, %v2961_v61  ;;  %vm2977_vm7 = vcmp.lt.s32.totalorder %v4774_v2, 2 }
 0x184   : > { %v2452_v55 = vadd.f32 -0.4999988, %v2451_v51  ;;  %v2459_v23 = vadd.f32 -0.16666654, %v2458_v32  ;;  %v2734_v42 = vsub.s32 %v2730_v24, %v2733_v38  ;;  %v2985_v10 = vsel %vm2979_vm2, %v2972_v54, 920167782 }
 0x185   : > { %v2988_v60 = vsel %vm2976_vm3, %v4800_v18, %v4802_v57  ;;  %v2726_v62 = vadd.s32 %v4752_v5, %v4750_v21  ;;  %v2994_v14 = vshrl.u32 %v4809_v50, 16  ;;  %v2984_v24 = vsel %vm2976_vm3, %v4811_v4, %v4800_v18 }
 0x186   : > { %v2453_v20 = vmul.f32 %v2452_v55, %v2448_v11  ;;  %v2460_v13 = vmul.f32 %v2459_v23, %v2448_v11  ;;  %vm2735_vm4 = vcmp.lt.s32.totalorder %v2734_v42, 0  ;;  %v2736_v9 = vsub.s32 0, %v2734_v42 }
 0x187   : > { %v2993_v11 = vand.u32 65535, %v4809_v50  ;;  %v2986_v21 = vsel %vm2978_vm6, %v4802_v57, %v2985_v10  ;;  %vm2634_vm10 = vcmp.lt.s32.totalorder %v4482_v52, 0  ;;  %vm4856_vm11 = vcmp.le.f32.partialorder %v2632_v59, 0.7853982 }
 0x188   : > { %v2454_v7 = vadd.f32 1.0, %v2453_v20  ;;  %v2461_v6 = vadd.f32 1.0, %v2460_v13  ;;  %v2737_v36 = vsel %vm2735_vm4, %v2736_v9, %v2734_v42  ;;  %v2987_v28 = vsel %vm2977_vm7, %v2984_v24, %v2986_v21 }
 0x189   : > { %v2738_v56 = vclz %v2737_v36  ;;  %v3017_v46 = vand.u32 65535, %v2987_v28  ;;  %v3018_v45 = vshrl.u32 %v2987_v28, 16  ;;  %v2960_v61 = vshrl.u32 %v3569_v25, %v4767_v35 }
 0x18a   : > { %v2462_v26 = vmul.f32 %v2461_v6, %v2446_v39  ;;  %v2471_v37 = vxor.u32 2147483648, %v2454_v7  ;;  %v2990_v39 = vsel %vm2978_vm6, %v2972_v54, %v2989_v27  ;;  %v2981_v59 = vsel %vm2979_vm2, %v4802_v57, 2102212464 }
 0x18b   : > { %v3400_v53 = vadd.s32 4294967294, %v2738_v56  ;;  %v2991_v1 = vsel %vm2977_vm7, %v2988_v60, %v2990_v39  ;;  %v3019_v54 = vmul.u32 %v3017_v46, %v2993_v11  ;;  %v3021_v9 = vmul.u32 %v3017_v46, %v2994_v14 }
 0x18c   : > { %v2468_v41 = vxor.u32 2147483648, %v2462_v26  ;;  %v2472_v48 = vsel %vm2470_vm12, %v2471_v37, %v2462_v26  ;;  %v2627_v22 = vsel %vm2625_vm5, %v2471_v37, %v2462_v26  ;;  %v2995_v47 = vand.u32 65535, %v2991_v1 }
 0x18d   : > { %vm3401_vm9 = vcmp.lt.s32.totalorder %v3400_v53, 0  ;;  %v2996_v32 = vshrl.u32 %v2991_v1, 16  ;;  %v3022_v37 = vmul.u32 %v3018_v45, %v2994_v14  ;;  %v3025_v56 = vshll.u32 %v3021_v9, 16 }
 0x18e   : > { %v2469_v30 = vsel %vm2467_vm13, %v2454_v7, %v2468_v41  ;;  %v2624_v3 = vsel %vm2622_vm14, %v2454_v7, %v2468_v41  ;;  %v2741_v58 = vsel %vm3401_vm9, 0, %v3400_v53  ;;  %v2997_v12 = vmul.u32 %v2995_v47, %v2993_v11 }
 0x18f   : > { %v2473_v5 = vsel %vm2466_vm15, %v2469_v30, %v2472_v48  ;;  %v2628_v8 = vsel %vm2621_vm0, %v2624_v3, %v2627_v22  ;;  %v2742_v63 = vsub.s32 32, %v2741_v58  ;;  %v2743_v51 = vshll.u32 %v2734_v42, %v2741_v58 }
 0x190   : > { %v2474_v34 = vsel %vm2463_vm1, nan, %v2473_v5  ;;  %v2629_v16 = vsel %vm2463_vm1, nan, %v2628_v8  ;;  %v2746_v19 = vsub.s32 4294967266, %v2741_v58  ;;  %v2998_v29 = vmul.u32 %v2996_v32, %v2993_v11 }
 0x191   : > { %2475 = vst [vmem:[%s3686_s24 + $0x2d] sm:$0x7] %v2474_v34  ;;  %v2744_v17 = vshrl.u32 %v2726_v62, %v2742_v63  ;;  %v2999_v15 = vmul.u32 %v2995_v47, %v2994_v14  ;;  %v3000_v31 = vmul.u32 %v2996_v32, %v2994_v14  ;;  %v3020_v7 = vmul.u32 %v3018_v45, %v2993_v11 }
 0x192   : > { %2630 = vst [vmem:[%s3686_s24 + $0x30] sm:$0x7] %v2629_v16  ;;  %v2747_v40 = vadd.s32 127, %v2746_v19  ;;  %v3001_v33 = vshll.u32 %v2998_v29, 16  ;;  %v3002_v25 = vshrl.u32 %v2998_v29, 16  ;;  %v2756_v48 = vsub.s32 4, %v4780_v0 }
 0x193   : > { %v2745_v23 = vor.u32 %v2744_v17, %v2743_v51  ;;  %v3003_v20 = vshll.u32 %v2999_v15, 16  ;;  %v3023_v36 = vshll.u32 %v3020_v7, 16  ;;  %v3004_v57 = vshrl.u32 %v2999_v15, 16 }
 0x194   : > { %v2748_v38 = vshll.u32 %v2747_v40, 23  ;;  %vm3005_vm8 = vc.u32 %v2997_v12, %v3001_v33  ;;  %v3007_v6 = vadd.s32 %v3001_v33, %v2997_v12  ;;  %v3024_v53 = vshrl.u32 %v3020_v7, 16 }
 0x195   : > { %v2752_v42 = vcvt.s32.f32 %v2745_v23  ;;  %v3006_v26 = vsel %vm3005_vm8, 1, %v3575_v43  ;;  %vm3027_vm13 = vc.u32 %v3019_v54, %v3023_v36  ;;  %v3029_v41 = vadd.s32 %v3023_v36, %v3019_v54 }
 0x196   : > { %v2749_v13 = vor.u32 4788187, %v2748_v38  ;;  %v3008_v35 = vadd.s32 %v3006_v26, %v3000_v31  ;;  %vm3009_vm12 = vc.u32 %v3007_v6, %v3003_v20  ;;  %v3028_v39 = vsel %vm3027_vm13, 1, %v3575_v43 }
 0x197   : > { %v3010_v60 = vsel %vm3009_vm12, 1, %v3575_v43  ;;  %v3030_v11 = vadd.s32 %v3028_v39, %v3022_v37  ;;  %vm3031_vm14 = vc.u32 %v3029_v41, %v3025_v56  ;;  %v2980_v14 = vsel %vm2976_vm3, %v2960_v61, %v4811_v4 }
 0x198   : > { %v2750_v27 = vand.u32 2147483647, %v2749_v13  ;;  %v3012_v22 = vadd.s32 %v3010_v60, %v3008_v35  ;;  %v2982_v30 = vsel %vm2978_vm6, %v4800_v18, %v2981_v59  ;;  %v3032_v24 = vsel %vm3031_vm14, 1, %v3575_v43 }
 0x199   : > { %v3026_v5 = vshrl.u32 %v3021_v9, 16  ;;  %v3034_v8 = vadd.s32 %v3032_v24, %v3030_v11  ;;  %v2757_v1 = vsel %vm2634_vm10, %v2756_v48, %v4780_v0  ;;  %v3033_v16 = vadd.s32 %v3029_v41, %v3025_v56 }
 0x19a   : > { %v2753_v10 = vmul.f32 %v2752_v42, %v2750_v27  ;;  %v3013_v3 = vadd.s32 %v3012_v22, %v3002_v25  ;;  %v2983_v18 = vsel %vm2977_vm7, %v2980_v14, %v2982_v30  ;;  %v2759_v47 = vsel %vm4856_vm11, 0, %v2757_v1 }
 0x19b   : > { %v3035_v43 = vadd.s32 %v3034_v8, %v3024_v53  ;;  %v3037_v28 = vmul.u32 %v4809_v50, %v2983_v18  ;;  %v2776_v40 = vadd.s32 3, %v2759_v47  ;;  %v2932_v45 = vand.u32 3, %v2759_v47 }
 0x19c   : > { %v2754_v62 = vxor.u32 2147483648, %v2753_v10  ;;  %v3014_v34 = vadd.s32 %v3013_v3, %v3004_v57  ;;  %vm2775_vm6 = vweird.f32 %v4482_v52 }
 0x19d   : > { %v3036_v19 = vadd.s32 %v3035_v43, %v3026_v5  ;;  %v2777_v38 = vand.u32 3, %v2776_v40  ;;  %vm2937_vm1 = vcmp.eq.s32.totalorder %v2932_v45, 2  ;;  %vm2934_vm4 = vcmp.eq.s32.totalorder %v2932_v45, 0 }
 0x19e   : > { %v2755_v21 = vsel %vm2634_vm10, %v2754_v62, %v2753_v10  ;;  %vm3039_vm15 = vc.u32 %v3014_v34, %v3033_v16  ;;  %vm2933_vm5 = vcmp.lt.s32.totalorder %v2932_v45, 2  ;;  %v3038_v48 = vadd.s32 %v3033_v16, %v3014_v34 }
 0x19f   : > { %v2758_v4 = vsel %vm4856_vm11, %v4482_v52, %v2755_v21  ;;  %v3040_v17 = vadd.s32 1, %v3036_v19  ;;  %vm2782_vm0 = vcmp.eq.s32.totalorder %v2777_v38, 2  ;;  %vm2778_vm2 = vcmp.lt.s32.totalorder %v2777_v38, 2 }
 0x1a0   : > { %v2760_v58 = vmul.f32 %v2758_v4, %v2758_v4  ;;  %vm2779_vm3 = vcmp.eq.s32.totalorder %v2777_v38, 0  ;;  %vm2946_vm10 = vcmp.lt.s32.totalorder %v4723_v49, 0  ;;  %vm2945_vm11 = vcmp.le.f32.partialorder %v2944_v44, 0.7853982 }
 0x1a1   : > { %v3041_v29 = vsel %vm3039_vm15, %v3040_v17, %v3036_v19 }
 0x1a2   : > { %v2761_v63 = vmul.f32 -0.001358992, %v2760_v58  ;;  %v2768_v51 = vmul.f32 -0.00019511016, %v2760_v58  ;;  %v3042_v15 = vadd.s32 %v3041_v29, %v3037_v28 }
 0x1a4   : > { %v2762_v0 = vadd.f32 0.041655596, %v2761_v63  ;;  %v2769_v32 = vadd.f32 0.008332121, %v2768_v51  ;;  %v3043_v55 = vadd.s32 536870912, %v3042_v15 }
 0x1a6   : > { %v2763_v46 = vmul.f32 %v2762_v0, %v2760_v58  ;;  %v2770_v12 = vmul.f32 %v2769_v32, %v2760_v58  ;;  %v3044_v33 = vshrl.u32 %v3043_v55, 30 }
 0x1a8   : > { %v2764_v2 = vadd.f32 -0.4999988, %v2763_v46  ;;  %v2771_v23 = vadd.f32 -0.16666654, %v2770_v12  ;;  %v3045_v50 = vshll.u32 %v3044_v33, 30  ;;  %v3068_v5 = vsub.s32 4, %v3044_v33 }
 0x1aa   : > { %v2765_v61 = vmul.f32 %v2764_v2, %v2760_v58  ;;  %v2772_v31 = vmul.f32 %v2771_v23, %v2760_v58  ;;  %v3046_v7 = vsub.s32 %v3042_v15, %v3045_v50 }
 0x1ac   : > { %v2766_v20 = vadd.f32 1.0, %v2765_v61  ;;  %v2773_v13 = vadd.f32 1.0, %v2772_v31  ;;  %vm3047_vm7 = vcmp.lt.s32.totalorder %v3046_v7, 0  ;;  %v3048_v27 = vsub.s32 0, %v3046_v7 }
 0x1ae   : > { %v2774_v42 = vmul.f32 %v2773_v13, %v2758_v4  ;;  %v2783_v54 = vxor.u32 2147483648, %v2766_v20  ;;  %v3049_v35 = vsel %vm3047_vm7, %v3048_v27, %v3046_v7  ;;  %v3069_v4 = vsel %vm2946_vm10, %v3068_v5, %v3044_v33 }
 0x1af   : > { %v3050_v60 = vclz %v3049_v35  ;;  %v3071_v58 = vsel %vm2945_vm11, 0, %v3069_v4 }
 0x1b0   : > { %v2780_v59 = vxor.u32 2147483648, %v2774_v42  ;;  %v2784_v6 = vsel %vm2782_vm0, %v2783_v54, %v2774_v42  ;;  %v2939_v9 = vsel %vm2937_vm1, %v2783_v54, %v2774_v42  ;;  %v3088_v51 = vadd.s32 3, %v3071_v58 }
 0x1b1   : > { %v3406_v41 = vadd.s32 4294967294, %v3050_v60  ;;  %v3244_v44 = vand.u32 3, %v3071_v58  ;;  %vm3087_vm1 = vweird.f32 %v4723_v49 }
 0x1b2   : > { %v2781_v26 = vsel %vm2779_vm3, %v2766_v20, %v2780_v59  ;;  %v2936_v37 = vsel %vm2934_vm4, %v2766_v20, %v2780_v59  ;;  %v3089_v17 = vand.u32 3, %v3088_v51 }
 0x1b3   : > { %v2785_v36 = vsel %vm2778_vm2, %v2781_v26, %v2784_v6  ;;  %v2940_v25 = vsel %vm2933_vm5, %v2936_v37, %v2939_v9  ;;  %vm3407_vm9 = vcmp.lt.s32.totalorder %v3406_v41, 0  ;;  %vm3249_vm12 = vcmp.eq.s32.totalorder %v3244_v44, 2 }
 0x1b4   : > { %v2786_v56 = vsel %vm2775_vm6, nan, %v2785_v36  ;;  %v2941_v10 = vsel %vm2775_vm6, nan, %v2940_v25  ;;  %v3053_v57 = vsel %vm3407_vm9, 0, %v3406_v41  ;;  %vm3094_vm8 = vcmp.eq.s32.totalorder %v3089_v17, 2 }
 0x1b5   : > { %2787 = vst [vmem:[%s3686_s24 + $0x33] sm:$0x7] %v2786_v56  ;;  %v3054_v22 = vsub.s32 32, %v3053_v57  ;;  %v3055_v39 = vshll.u32 %v3046_v7, %v3053_v57  ;;  %v3058_v62 = vsub.s32 4294967266, %v3053_v57  ;;  %vm3090_vm13 = vcmp.lt.s32.totalorder %v3089_v17, 2 }
 0x1b6   : > { %2942 = vst [vmem:[%s3686_s24 + $0x36] sm:$0x7] %v2941_v10  ;;  %vm3091_vm14 = vcmp.eq.s32.totalorder %v3089_v17, 0  ;;  %vm3246_vm15 = vcmp.eq.s32.totalorder %v3244_v44, 0  ;;  %vm3245_vm0 = vcmp.lt.s32.totalorder %v3244_v44, 2 }
 0x1b7   : > { %v3056_v52 = vshrl.u32 %v3038_v48, %v3054_v22  ;;  %v3059_v53 = vadd.s32 127, %v3058_v62 }
 0x1b9   : > { %v3057_v11 = vor.u32 %v3056_v52, %v3055_v39  ;;  %v3060_v14 = vshll.u32 %v3059_v53, 23 }
 0x1bb   : > { %v3061_v30 = vor.u32 4788187, %v3060_v14  ;;  %v3064_v3 = vcvt.s32.f32 %v3057_v11 }
 0x1bd   : > { %v3062_v24 = vand.u32 2147483647, %v3061_v30 }
 0x1bf   : > { %v3065_v21 = vmul.f32 %v3064_v3, %v3062_v24 }
 0x1c1   : > { %v3066_v8 = vxor.u32 2147483648, %v3065_v21 }
 0x1c3   : > { %v3067_v1 = vsel %vm2946_vm10, %v3066_v8, %v3065_v21 }
 0x1c4   : > { %v3070_v34 = vsel %vm2945_vm11, %v4723_v49, %v3067_v1 }
 0x1c5   : > { %v3072_v16 = vmul.f32 %v3070_v34, %v3070_v34 }
 0x1c7   : > { %v3073_v18 = vmul.f32 -0.001358992, %v3072_v16  ;;  %v3080_v43 = vmul.f32 -0.00019511016, %v3072_v16 }
 0x1c9   : > { %v3074_v47 = vadd.f32 0.041655596, %v3073_v18  ;;  %v3081_v63 = vadd.f32 0.008332121, %v3080_v43 }
 0x1cb   : > { %v3075_v19 = vmul.f32 %v3074_v47, %v3072_v16  ;;  %v3082_v28 = vmul.f32 %v3081_v63, %v3072_v16 }
 0x1cd   : > { %v3076_v0 = vadd.f32 -0.4999988, %v3075_v19  ;;  %v3083_v32 = vadd.f32 -0.16666654, %v3082_v28 }
 0x1cf   : > { %v3077_v40 = vmul.f32 %v3076_v0, %v3072_v16  ;;  %v3084_v46 = vmul.f32 %v3083_v32, %v3072_v16 }
 0x1d1   : > { %v3078_v12 = vadd.f32 1.0, %v3077_v40  ;;  %v3085_v29 = vadd.f32 1.0, %v3084_v46 }
 0x1d3   : > { %v3086_v15 = vmul.f32 %v3085_v29, %v3070_v34  ;;  %v3095_v2 = vxor.u32 2147483648, %v3078_v12 }
 0x1d5   : > { %v3092_v23 = vxor.u32 2147483648, %v3086_v15  ;;  %v3096_v38 = vsel %vm3094_vm8, %v3095_v2, %v3086_v15  ;;  %v3251_v45 = vsel %vm3249_vm12, %v3095_v2, %v3086_v15 }
 0x1d7   : > { %v3093_v55 = vsel %vm3091_vm14, %v3078_v12, %v3092_v23  ;;  %v3248_v61 = vsel %vm3246_vm15, %v3078_v12, %v3092_v23 }
 0x1d8   : > { %v3097_v31 = vsel %vm3090_vm13, %v3093_v55, %v3096_v38  ;;  %v3252_v33 = vsel %vm3245_vm0, %v3248_v61, %v3251_v45 }
 0x1d9   : > { %v3098_v20 = vsel %vm3087_vm1, nan, %v3097_v31  ;;  %v3253_v13 = vsel %vm3087_vm1, nan, %v3252_v33 }
 0x1da   : > { %3099 = vst [vmem:[%s3686_s24 + $0x39] sm:$0x7] %v3098_v20 }
 0x1db   : > { %3254 = vst [vmem:[%s3686_s24 + $0x3c] sm:$0x7] %v3253_v13 }
 0x1dc   : > { %3528 = shalt.err (!%p3525_p4)
}
 0x1dd   : > { %s3576_s14 = smov 128   ;;  %s3577_s16 = smov 256  }
 0x1de   : > { %s3578_s20 = smov 8  }
 0x1df   : > { %3417 = dma.vmem_to_hbm [thread:$0]  (%p3639_p11), %s3268_s28, 1024, %s3270_s10, %s3256_s29, %s3576_s14, %s3577_s16, %s3578_s20  }
 0x1e0 PF: > { %s3284_s21 = sand.u32 1, %s3555_s6   ;;  %p4956_p7 = scmp.ge.s32.totalorder %s3567_s9, 2 }
 0x1e1   : > { %s3285_s22 = scalar_lea.sflag [#allocation4], %s3284_s21 }
 0x1e2   : > { %p3424_p5 = pnand %p4956_p7, %p3643_p12 }
 0x1e4   : > { %p3425_p8 = pneg %p3424_p5 }
 0x1e6   : > { %3550 = dma.done.wait (%p3425_p8), %s3285_s22, 1024  }
 0x1e7   : > { %3552 = vsyncadd (%p3425_p8), %s3285_s22, 4294966272  ;;  %p14_p10 = scmp.ge.s32.totalorder %s3614_s12, 4   ;;  %s4957_s6 = smov %s3559_s7 }
 0x1e8   : > { %s4958_s7 = smov %s3563_s8  ;;  %s4959_s8 = smov %s3626_s15 }
 0x1e9   : > { %s4960_s9 = smov %s3614_s12  ;;  %16 = sbr.rel (!%p14_p10) target bundleno = 5 (0x5), region = 69 }
 0x1ee   :  { %3291 = vsyncpa [#allocation3], 1 }
 0x1ef   :  { %3293 = vsyncpa [#allocation3 + $0x1], 1 }
 0x1f0   :  { %3294 = vsyncpa [#allocation4], 1 }
 0x1f1   :  { %3296 = vsyncpa [#allocation4 + $0x1], 1 }

</bundles_post_ra>
